<compile_context>
chip_gen: v7x
topology: tpu7x:2x2x1
jax: 0.10.0
libtpu: 0.0.40
codegen_flags: <defaults>
</compile_context>

<pallas_src>
import math
from functools import partial

import jax
import jax.numpy as jnp
from jax.experimental import pallas as pl
from jax.experimental.pallas import tpu as pltpu

_P192 = 256  # the 192-channel branch heads, padded to a lane (128) multiple


def _round_up(n, m):
  return ((n + m - 1) // m) * m


def _pad_rows(v, before, after):
  """Zero-pad a [B, L, C] VMEM array along the spatial (second) axis."""
  B, _, C = v.shape
  parts = []
  if before:
    parts.append(jnp.zeros((B, before, C), v.dtype))
  parts.append(v)
  if after:
    parts.append(jnp.zeros((B, after, C), v.dtype))
  return jnp.concatenate(parts, axis=1)


# ---------------------------------------------------------------------------
# Fused InceptionC kernel (one grid step == B batch samples)
# ---------------------------------------------------------------------------
def _inception_c_kernel(
    x_ref,         # [B, L, CinP]   bf16
    w_head_ref,    # [CinP, CHP]    bf16  (unscaled conv weights)
    sc_head_ref,   # [1, CHP]       f32   BN scale
    sh_head_ref,   # [1, CHP]       f32   BN shift
    w72_ref,       # [7*c7p, 192]   bf16
    sc72_ref, sh72_ref,        # [1, 192] f32
    w7d2_ref,      # [7*c7p, c7p]   bf16
    sc7d2_ref, sh7d2_ref,      # [1, c7p] f32
    w7d3_ref,      # [7*c7p, 192]   bf16
    sc7d3_ref, sh7d3_ref,      # [1, 192] f32
    out_ref,       # [B, L, 768]    f32
    *, B, L, c7p):
  f32 = jnp.float32
  bf16 = jnp.bfloat16
  M = B * L

  # ---- fused 1x1 heads of all four branches: one MXU matmul ---------------
  x2d = x_ref[...].reshape(M, x_ref.shape[-1])                    # bf16
  head = jnp.dot(x2d, w_head_ref[...], preferred_element_type=f32)
  head = head * sc_head_ref[...] + sh_head_ref[...]               # [M, CHP]

  o1 = _P192
  o2 = o1 + c7p
  o3 = o2 + c7p

  def conv7(v, w_ref, sc_ref, sh_ref):
    """'same' 7-tap conv (padding=3) as a single matmul.

    v: [B, L, cin_p] bf16.  The 7 shifted slices of the zero-margined input
    are lane-concatenated into [M, 7*cin_p] and hit the MXU once against the
    pre-flattened [7*cin_p, cout] weights.  BN affine applied in f32.
    """
    cin_p = v.shape[-1]
    vp = _pad_rows(v, 3, 3)                                       # [B, L+6, cin_p]
    lhs = jnp.concatenate([vp[:, t:t + L, :] for t in range(7)],
                          axis=-1).reshape(M, 7 * cin_p)          # [M, 7*cin_p]
    y = jnp.dot(lhs, w_ref[...], preferred_element_type=f32)
    return y * sc_ref[...] + sh_ref[...]                          # [M, cout]

  # ---- branch1: 1x1 -> BN -> relu ------------------------------------------
  b1 = jnp.maximum(head[:, 0:192], 0.0)                           # [M, 192]

  # ---- branch7: 1x1 -> relu -> conv7 -> BN -> relu --------------------------
  a7 = jnp.maximum(head[:, o1:o2], 0.0).astype(bf16).reshape(B, L, c7p)
  b7 = jnp.maximum(conv7(a7, w72_ref, sc72_ref, sh72_ref), 0.0)   # [M, 192]

  # ---- branch7dbl: 1x1 -> relu -> conv7 -> relu -> conv7 -> relu ------------
  a7d = jnp.maximum(head[:, o2:o3], 0.0).astype(bf16).reshape(B, L, c7p)
  y2 = jnp.maximum(conv7(a7d, w7d2_ref, sc7d2_ref, sh7d2_ref), 0.0)
  y2 = y2.astype(bf16).reshape(B, L, c7p)
  b7d = jnp.maximum(conv7(y2, w7d3_ref, sc7d3_ref, sh7d3_ref), 0.0)  # [M, 192]

  # ---- branch_pool: avg_pool(3,1,1, count_include_pad=False) -> 1x1 -> relu -
  # The 1x1 conv + BN affine commute with the valid-count average because the
  # average weights sum to one over *valid* taps; the zero margin rows
  # contribute neither activation nor bias to psum, and cnt counts only the
  # valid taps.
  pp = head[:, o3:o3 + 192].reshape(B, L, 192)
  ppad = _pad_rows(pp, 1, 1)                                      # [B, L+2, 192]
  psum = ppad[:, 0:L] + ppad[:, 1:L + 1] + ppad[:, 2:L + 2]
  r = jax.lax.broadcasted_iota(jnp.int32, (1, L, 1), 1)
  cnt = 1.0 + jnp.where(r >= 1, 1.0, 0.0) + jnp.where(r < L - 1, 1.0, 0.0)
  bp = jnp.maximum(psum * (1.0 / cnt), 0.0).reshape(M, 192)       # recip-mult

  # ---- torch.cat(outputs, dim=1): one lane-dense 768-wide store ------------
  out = jnp.concatenate([b1, b7, b7d, bp], axis=-1)               # [M, 768]
  out_ref[...] = out.reshape(B, L, 4 * 192).astype(out_ref.dtype)


# ---------------------------------------------------------------------------
# Wrapper: layout conversion + pallas_call
# ---------------------------------------------------------------------------
def _pick_batch_tile(N, L, target_rows=256):
  """Per-step batch B: fill MXU M (~256 rows) but keep >=2 grid steps (v7x)."""
  best = 1
  for b in range(1, N + 1):
    if N % b:
      continue
    if N > 1 and N // b < 2:       # keep both v7x TensorCores busy
      continue
    best = b
    if b * L >= target_rows:
      break
  return best


def inception_c_forward(packed, x_ncl):
  """x_ncl: [N, Cin, L] f32  ->  [N, 768, L] f32 (matches torch.cat(..., 1))."""
  N, Cin, L = x_ncl.shape
  cinp, CHP = packed["w_head"].shape
  c7p = packed["w7d2"].shape[1]

  x = jnp.transpose(x_ncl, (0, 2, 1))                     # [N, L, Cin]
  if cinp > Cin:                                          # lane-pad matmul K
    x = jnp.pad(x, ((0, 0), (0, 0), (0, cinp - Cin)))
  x = x.astype(jnp.bfloat16)                              # [N, L, CinP]

  B = _pick_batch_tile(N, L)
  G = N // B
  rep2 = lambda n: (0, 0)

  out = pl.pallas_call(
      partial(_inception_c_kernel, B=B, L=L, c7p=c7p),
      out_shape=jax.ShapeDtypeStruct((N, L, 4 * 192), jnp.float32),
      grid=(G,),
      in_specs=[
          pl.BlockSpec((B, L, cinp), lambda n: (n, 0, 0)),
          pl.BlockSpec((cinp, CHP), rep2),
          pl.BlockSpec((1, CHP), rep2),
          pl.BlockSpec((1, CHP), rep2),
          pl.BlockSpec((7 * c7p, 192), rep2),
          pl.BlockSpec((1, 192), rep2),
          pl.BlockSpec((1, 192), rep2),
          pl.BlockSpec((7 * c7p, c7p), rep2),
          pl.BlockSpec((1, c7p), rep2),
          pl.BlockSpec((1, c7p), rep2),
          pl.BlockSpec((7 * c7p, 192), rep2),
          pl.BlockSpec((1, 192), rep2),
          pl.BlockSpec((1, 192), rep2),
      ],
      out_specs=pl.BlockSpec((B, L, 4 * 192), lambda n: (n, 0, 0)),
      compiler_params=pltpu.CompilerParams(
          dimension_semantics=("parallel",)),             # samples across TCs
  )(x, packed["w_head"], packed["sc_head"], packed["sh_head"],
    packed["w72"], packed["sc72"], packed["sh72"],
    packed["w7d2"], packed["sc7d2"], packed["sh7d2"],
    packed["w7d3"], packed["sc7d3"], packed["sh7d3"])

  return jnp.transpose(out, (0, 2, 1))                    # back to NCL


# ---------------------------------------------------------------------------
# Deterministic synthetic parameters (BasicConv1d = Conv1d(bias=False)+BN+ReLU)
# ---------------------------------------------------------------------------
def _make_bc(key, cin, cout, k):
  k1, k2, k3, k4, k5 = jax.random.split(key, 5)
  w = jax.random.normal(k1, (cout, cin, k), jnp.float32) / math.sqrt(cin * k)
  gamma = 1.0 + 0.1 * jax.random.normal(k2, (cout,), jnp.float32)
  beta = 0.1 * jax.random.normal(k3, (cout,), jnp.float32)
  mean = 0.1 * jax.random.normal(k4, (cout,), jnp.float32)
  var = 1.0 + 0.1 * jax.random.uniform(k5, (cout,), jnp.float32)
  scale = gamma / jnp.sqrt(var + 1e-3)    # BatchNorm1d(eps=0.001), eval mode
  shift = beta - mean * scale
  return dict(w=w, scale=scale, shift=shift)


def build_raw_params(key, in_channels, c7):
  ks = jax.random.split(key, 7)
  return dict(
      branch1=_make_bc(ks[0], in_channels, 192, 1),
      branch7_1=_make_bc(ks[1], in_channels, c7, 1),
      branch7_2=_make_bc(ks[2], c7, 192, 7),
      branch7dbl_1=_make_bc(ks[3], in_channels, c7, 1),
      branch7dbl_2=_make_bc(ks[4], c7, c7, 7),
      branch7dbl_3=_make_bc(ks[5], c7, 192, 7),
      branch_pool=_make_bc(ks[6], in_channels, 192, 1),
  )


def pack_params(raw, in_channels, c7):
  """Pad/transpose weights to lane-aligned matmul layout (bf16); BN affine f32."""
  bf16 = jnp.bfloat16
  f32 = jnp.float32
  cinp = _round_up(in_channels, 128)
  c7p = _round_up(c7, 128)

  def mat1(p, cout_pad):                 # 1x1 conv -> [cinp, cout_pad]
    w = p["w"][:, :, 0].T                # [cin, cout]
    return jnp.pad(w, ((0, cinp - w.shape[0]), (0, cout_pad - w.shape[1])))

  def vec(v, cout_pad):
    return jnp.pad(v, (0, cout_pad - v.shape[0]))

  def taps_flat(p, cin_pad, cout_pad):   # 7-tap conv -> [7*cin_pad, cout_pad]
    w = jnp.transpose(p["w"], (2, 1, 0))  # [7, cin, cout]
    w = jnp.pad(w, ((0, 0), (0, cin_pad - w.shape[1]),
                    (0, cout_pad - w.shape[2])))
    return w.reshape(7 * cin_pad, cout_pad)

  w_head = jnp.concatenate(
      [mat1(raw["branch1"], _P192), mat1(raw["branch7_1"], c7p),
       mat1(raw["branch7dbl_1"], c7p), mat1(raw["branch_pool"], _P192)],
      axis=1)
  sc_head = jnp.concatenate(
      [vec(raw["branch1"]["scale"], _P192),
       vec(raw["branch7_1"]["scale"], c7p),
       vec(raw["branch7dbl_1"]["scale"], c7p),
       vec(raw["branch_pool"]["scale"], _P192)])[None, :]
  sh_head = jnp.concatenate(
      [vec(raw["branch1"]["shift"], _P192),
       vec(raw["branch7_1"]["shift"], c7p),
       vec(raw["branch7dbl_1"]["shift"], c7p),
       vec(raw["branch_pool"]["shift"], _P192)])[None, :]

  return dict(
      w_head=w_head.astype(bf16),
      sc_head=sc_head.astype(f32), sh_head=sh_head.astype(f32),
      w72=taps_flat(raw["branch7_2"], c7p, 192).astype(bf16),
      sc72=raw["branch7_2"]["scale"][None, :].astype(f32),
      sh72=raw["branch7_2"]["shift"][None, :].astype(f32),
      w7d2=taps_flat(raw["branch7dbl_2"], c7p, c7p).astype(bf16),
      sc7d2=vec(raw["branch7dbl_2"]["scale"], c7p)[None, :].astype(f32),
      sh7d2=vec(raw["branch7dbl_2"]["shift"], c7p)[None, :].astype(f32),
      w7d3=taps_flat(raw["branch7dbl_3"], c7p, 192).astype(bf16),
      sc7d3=raw["branch7dbl_3"]["scale"][None, :].astype(f32),
      sh7d3=raw["branch7dbl_3"]["shift"][None, :].astype(f32),
  )


# ---------------------------------------------------------------------------
# Plain-JAX reference (f32) for a correctness check
# ---------------------------------------------------------------------------
def _conv1d_nlc(x, w_oik, padding=0):
  return jax.lax.conv_general_dilated(
      x, jnp.transpose(w_oik, (2, 1, 0)),
      window_strides=(1,), padding=[(padding, padding)],
      dimension_numbers=("NWC", "WIO", "NWC"))


def _bc_ref(p, x, padding=0):
  y = _conv1d_nlc(x, p["w"], padding=padding)
  return jnp.maximum(y * p["scale"] + p["shift"], 0.0)


def _avgpool3_cif(x):  # F.avg_pool1d(k=3, s=1, p=1, count_include_pad=False)
  N, L, C = x.shape
  xp = jnp.pad(x, ((0, 0), (1, 1), (0, 0)))
  s = xp[:, 0:L] + xp[:, 1:L + 1] + xp[:, 2:L + 2]
  idx = jnp.arange(L)
  cnt = 1.0 + (idx >= 1).astype(jnp.float32) + (idx < L - 1).astype(jnp.float32)
  return s / cnt[None, :, None]


def inception_c_reference(raw, x_ncl):
  x = jnp.transpose(x_ncl, (0, 2, 1))
  b1 = _bc_ref(raw["branch1"], x)
  b7 = _bc_ref(raw["branch7_2"], _bc_ref(raw["branch7_1"], x), padding=3)
  bd = _bc_ref(raw["branch7dbl_3"],
               _bc_ref(raw["branch7dbl_2"],
                       _bc_ref(raw["branch7dbl_1"], x), padding=3), padding=3)
  bp = _bc_ref(raw["branch_pool"], _avgpool3_cif(x))
  return jnp.transpose(jnp.concatenate([b1, b7, bd, bp], axis=-1), (0, 2, 1))


# ---------------------------------------------------------------------------
if __name__ == "__main__":
  key = jax.random.PRNGKey(0)
  N, Cin, L, c7 = 2, 64, 32, 48     # small shapes consistent with InceptionC

  raw = build_raw_params(jax.random.fold_in(key, 1), Cin, c7)
  packed = pack_params(raw, Cin, c7)
  x = jax.random.normal(jax.random.fold_in(key, 2), (N, Cin, L), jnp.float32)

  fwd = jax.jit(inception_c_forward)
  out = fwd(packed, x)
  jax.block_until_ready(out)

  assert out.shape == (N, 4 * 192, L), out.shape
  assert bool(jnp.all(jnp.isfinite(out)))

  ref = inception_c_reference(raw, x)
  rel = float(jnp.max(jnp.abs(out - ref)) / (jnp.max(jnp.abs(ref)) + 1e-6))
  assert rel < 5e-2, f"mismatch vs reference: rel={rel}"

  print("KERNEL_OK")
</pallas_src>

<mosaic_0001>
module attributes {stable_mosaic.version = 11 : i64} {
  func.func @_inception_c_kernel(%arg0: i32, %arg1: memref<1x32x128xbf16, #tpu.memory_space<vmem>>, %arg2: memref<128x768xbf16, #tpu.memory_space<vmem>>, %arg3: memref<1x768xf32, #tpu.memory_space<vmem>>, %arg4: memref<1x768xf32, #tpu.memory_space<vmem>>, %arg5: memref<896x192xbf16, #tpu.memory_space<vmem>>, %arg6: memref<1x192xf32, #tpu.memory_space<vmem>>, %arg7: memref<1x192xf32, #tpu.memory_space<vmem>>, %arg8: memref<896x128xbf16, #tpu.memory_space<vmem>>, %arg9: memref<1x128xf32, #tpu.memory_space<vmem>>, %arg10: memref<1x128xf32, #tpu.memory_space<vmem>>, %arg11: memref<896x192xbf16, #tpu.memory_space<vmem>>, %arg12: memref<1x192xf32, #tpu.memory_space<vmem>>, %arg13: memref<1x192xf32, #tpu.memory_space<vmem>>, %arg14: memref<1x32x768xf32, #tpu.memory_space<vmem>>) attributes {dimension_semantics = [#tpu.dimension_semantics<parallel>], iteration_bounds = array<i64: 2>, scalar_prefetch = 0 : i64, scratch_operands = 0 : i64, tpu.core_type = #tpu.core_type<tc>, window_params = [{transform_indices = @transform_0, window_bounds = array<i64: 1, 32, 128>}, {pipeline_mode = #tpu.pipeline_mode<synchronous>, transform_indices = @transform_1, window_bounds = array<i64: 128, 768>}, {pipeline_mode = #tpu.pipeline_mode<synchronous>, transform_indices = @transform_2, window_bounds = array<i64: 1, 768>}, {pipeline_mode = #tpu.pipeline_mode<synchronous>, transform_indices = @transform_3, window_bounds = array<i64: 1, 768>}, {pipeline_mode = #tpu.pipeline_mode<synchronous>, transform_indices = @transform_4, window_bounds = array<i64: 896, 192>}, {pipeline_mode = #tpu.pipeline_mode<synchronous>, transform_indices = @transform_5, window_bounds = array<i64: 1, 192>}, {pipeline_mode = #tpu.pipeline_mode<synchronous>, transform_indices = @transform_6, window_bounds = array<i64: 1, 192>}, {pipeline_mode = #tpu.pipeline_mode<synchronous>, transform_indices = @transform_7, window_bounds = array<i64: 896, 128>}, {pipeline_mode = #tpu.pipeline_mode<synchronous>, transform_indices = @transform_8, window_bounds = array<i64: 1, 128>}, {pipeline_mode = #tpu.pipeline_mode<synchronous>, transform_indices = @transform_9, window_bounds = array<i64: 1, 128>}, {pipeline_mode = #tpu.pipeline_mode<synchronous>, transform_indices = @transform_10, window_bounds = array<i64: 896, 192>}, {pipeline_mode = #tpu.pipeline_mode<synchronous>, transform_indices = @transform_11, window_bounds = array<i64: 1, 192>}, {pipeline_mode = #tpu.pipeline_mode<synchronous>, transform_indices = @transform_12, window_bounds = array<i64: 1, 192>}, {transform_indices = @transform_13, window_bounds = array<i64: 1, 32, 768>}]} {
    %c0 = arith.constant 0 : index
    %c0_0 = arith.constant 0 : index
    %c0_1 = arith.constant 0 : index
    %0 = vector.load %arg1[%c0, %c0_0, %c0_1] : memref<1x32x128xbf16, #tpu.memory_space<vmem>>, vector<1x32x128xbf16>
    %1 = vector.shape_cast %0 : vector<1x32x128xbf16> to vector<32x128xbf16>
    %c0_2 = arith.constant 0 : index
    %c0_3 = arith.constant 0 : index
    %2 = vector.load %arg2[%c0_2, %c0_3] : memref<128x768xbf16, #tpu.memory_space<vmem>>, vector<128x768xbf16>
    %cst = arith.constant dense<0.000000e+00> : vector<32x768xf32>
    %3 = tpu.matmul %1, %2, %cst {dimension_numbers = #tpu.dot_dimension_numbers<[1], [0], [0], [1], [0, 0, 1, 1], [], []>} : vector<32x128xbf16>, vector<128x768xbf16>, vector<32x768xf32> -> vector<32x768xf32>
    %c0_4 = arith.constant 0 : index
    %c0_5 = arith.constant 0 : index
    %4 = vector.load %arg3[%c0_4, %c0_5] : memref<1x768xf32, #tpu.memory_space<vmem>>, vector<1x768xf32>
    %5 = vector.broadcast %4 : vector<1x768xf32> to vector<32x768xf32>
    %6 = arith.mulf %3, %5 : vector<32x768xf32>
    %c0_6 = arith.constant 0 : index
    %c0_7 = arith.constant 0 : index
    %7 = vector.load %arg4[%c0_6, %c0_7] : memref<1x768xf32, #tpu.memory_space<vmem>>, vector<1x768xf32>
    %8 = vector.broadcast %7 : vector<1x768xf32> to vector<32x768xf32>
    %9 = arith.addf %6, %8 : vector<32x768xf32>
    %10 = vector.extract_strided_slice %9 {offsets = [0, 0], sizes = [32, 192], strides = [1, 1]} : vector<32x768xf32> to vector<32x192xf32>
    %cst_8 = arith.constant 0.000000e+00 : f32
    %11 = vector.broadcast %cst_8 : f32 to vector<32x192xf32>
    %12 = arith.maximumf %10, %11 : vector<32x192xf32>
    %13 = vector.extract_strided_slice %9 {offsets = [0, 256], sizes = [32, 128], strides = [1, 1]} : vector<32x768xf32> to vector<32x128xf32>
    %cst_9 = arith.constant 0.000000e+00 : f32
    %14 = vector.broadcast %cst_9 : f32 to vector<32x128xf32>
    %15 = arith.maximumf %13, %14 : vector<32x128xf32>
    %16 = arith.truncf %15 : vector<32x128xf32> to vector<32x128xbf16>
    %17 = vector.shape_cast %16 : vector<32x128xbf16> to vector<1x32x128xbf16>
    %cst_10 = arith.constant 0.000000e+00 : bf16
    %18 = vector.broadcast %cst_10 : bf16 to vector<1x3x128xbf16>
    %cst_11 = arith.constant 0.000000e+00 : bf16
    %19 = vector.broadcast %cst_11 : bf16 to vector<1x3x128xbf16>
    %20 = tpu.concatenate %18, %17, %19 in 1 : vector<1x3x128xbf16>, vector<1x32x128xbf16>, vector<1x3x128xbf16> -> vector<1x38x128xbf16>
    %21 = vector.extract_strided_slice %20 {offsets = [0, 0, 0], sizes = [1, 32, 128], strides = [1, 1, 1]} : vector<1x38x128xbf16> to vector<1x32x128xbf16>
    %22 = vector.extract_strided_slice %20 {offsets = [0, 1, 0], sizes = [1, 32, 128], strides = [1, 1, 1]} : vector<1x38x128xbf16> to vector<1x32x128xbf16>
    %23 = vector.extract_strided_slice %20 {offsets = [0, 2, 0], sizes = [1, 32, 128], strides = [1, 1, 1]} : vector<1x38x128xbf16> to vector<1x32x128xbf16>
    %24 = vector.extract_strided_slice %20 {offsets = [0, 3, 0], sizes = [1, 32, 128], strides = [1, 1, 1]} : vector<1x38x128xbf16> to vector<1x32x128xbf16>
    %25 = vector.extract_strided_slice %20 {offsets = [0, 4, 0], sizes = [1, 32, 128], strides = [1, 1, 1]} : vector<1x38x128xbf16> to vector<1x32x128xbf16>
    %26 = vector.extract_strided_slice %20 {offsets = [0, 5, 0], sizes = [1, 32, 128], strides = [1, 1, 1]} : vector<1x38x128xbf16> to vector<1x32x128xbf16>
    %27 = vector.extract_strided_slice %20 {offsets = [0, 6, 0], sizes = [1, 32, 128], strides = [1, 1, 1]} : vector<1x38x128xbf16> to vector<1x32x128xbf16>
    %28 = tpu.concatenate %21, %22, %23, %24, %25, %26, %27 in 2 : vector<1x32x128xbf16>, vector<1x32x128xbf16>, vector<1x32x128xbf16>, vector<1x32x128xbf16>, vector<1x32x128xbf16>, vector<1x32x128xbf16>, vector<1x32x128xbf16> -> vector<1x32x896xbf16>
    %29 = vector.shape_cast %28 : vector<1x32x896xbf16> to vector<32x896xbf16>
    %c0_12 = arith.constant 0 : index
    %c0_13 = arith.constant 0 : index
    %30 = vector.load %arg5[%c0_12, %c0_13] : memref<896x192xbf16, #tpu.memory_space<vmem>>, vector<896x192xbf16>
    %cst_14 = arith.constant dense<0.000000e+00> : vector<32x192xf32>
    %31 = tpu.matmul %29, %30, %cst_14 {dimension_numbers = #tpu.dot_dimension_numbers<[1], [0], [0], [1], [0, 0, 1, 1], [], []>} : vector<32x896xbf16>, vector<896x192xbf16>, vector<32x192xf32> -> vector<32x192xf32>
    %c0_15 = arith.constant 0 : index
    %c0_16 = arith.constant 0 : index
    %32 = vector.load %arg6[%c0_15, %c0_16] : memref<1x192xf32, #tpu.memory_space<vmem>>, vector<1x192xf32>
    %33 = vector.broadcast %32 : vector<1x192xf32> to vector<32x192xf32>
    %34 = arith.mulf %31, %33 : vector<32x192xf32>
    %c0_17 = arith.constant 0 : index
    %c0_18 = arith.constant 0 : index
    %35 = vector.load %arg7[%c0_17, %c0_18] : memref<1x192xf32, #tpu.memory_space<vmem>>, vector<1x192xf32>
    %36 = vector.broadcast %35 : vector<1x192xf32> to vector<32x192xf32>
    %37 = arith.addf %34, %36 : vector<32x192xf32>
    %cst_19 = arith.constant 0.000000e+00 : f32
    %38 = vector.broadcast %cst_19 : f32 to vector<32x192xf32>
    %39 = arith.maximumf %37, %38 : vector<32x192xf32>
    %40 = vector.extract_strided_slice %9 {offsets = [0, 384], sizes = [32, 128], strides = [1, 1]} : vector<32x768xf32> to vector<32x128xf32>
    %cst_20 = arith.constant 0.000000e+00 : f32
    %41 = vector.broadcast %cst_20 : f32 to vector<32x128xf32>
    %42 = arith.maximumf %40, %41 : vector<32x128xf32>
    %43 = arith.truncf %42 : vector<32x128xf32> to vector<32x128xbf16>
    %44 = vector.shape_cast %43 : vector<32x128xbf16> to vector<1x32x128xbf16>
    %cst_21 = arith.constant 0.000000e+00 : bf16
    %45 = vector.broadcast %cst_21 : bf16 to vector<1x3x128xbf16>
    %cst_22 = arith.constant 0.000000e+00 : bf16
    %46 = vector.broadcast %cst_22 : bf16 to vector<1x3x128xbf16>
    %47 = tpu.concatenate %45, %44, %46 in 1 : vector<1x3x128xbf16>, vector<1x32x128xbf16>, vector<1x3x128xbf16> -> vector<1x38x128xbf16>
    %48 = vector.extract_strided_slice %47 {offsets = [0, 0, 0], sizes = [1, 32, 128], strides = [1, 1, 1]} : vector<1x38x128xbf16> to vector<1x32x128xbf16>
    %49 = vector.extract_strided_slice %47 {offsets = [0, 1, 0], sizes = [1, 32, 128], strides = [1, 1, 1]} : vector<1x38x128xbf16> to vector<1x32x128xbf16>
    %50 = vector.extract_strided_slice %47 {offsets = [0, 2, 0], sizes = [1, 32, 128], strides = [1, 1, 1]} : vector<1x38x128xbf16> to vector<1x32x128xbf16>
    %51 = vector.extract_strided_slice %47 {offsets = [0, 3, 0], sizes = [1, 32, 128], strides = [1, 1, 1]} : vector<1x38x128xbf16> to vector<1x32x128xbf16>
    %52 = vector.extract_strided_slice %47 {offsets = [0, 4, 0], sizes = [1, 32, 128], strides = [1, 1, 1]} : vector<1x38x128xbf16> to vector<1x32x128xbf16>
    %53 = vector.extract_strided_slice %47 {offsets = [0, 5, 0], sizes = [1, 32, 128], strides = [1, 1, 1]} : vector<1x38x128xbf16> to vector<1x32x128xbf16>
    %54 = vector.extract_strided_slice %47 {offsets = [0, 6, 0], sizes = [1, 32, 128], strides = [1, 1, 1]} : vector<1x38x128xbf16> to vector<1x32x128xbf16>
    %55 = tpu.concatenate %48, %49, %50, %51, %52, %53, %54 in 2 : vector<1x32x128xbf16>, vector<1x32x128xbf16>, vector<1x32x128xbf16>, vector<1x32x128xbf16>, vector<1x32x128xbf16>, vector<1x32x128xbf16>, vector<1x32x128xbf16> -> vector<1x32x896xbf16>
    %56 = vector.shape_cast %55 : vector<1x32x896xbf16> to vector<32x896xbf16>
    %c0_23 = arith.constant 0 : index
    %c0_24 = arith.constant 0 : index
    %57 = vector.load %arg8[%c0_23, %c0_24] : memref<896x128xbf16, #tpu.memory_space<vmem>>, vector<896x128xbf16>
    %cst_25 = arith.constant dense<0.000000e+00> : vector<32x128xf32>
    %58 = tpu.matmul %56, %57, %cst_25 {dimension_numbers = #tpu.dot_dimension_numbers<[1], [0], [0], [1], [0, 0, 1, 1], [], []>} : vector<32x896xbf16>, vector<896x128xbf16>, vector<32x128xf32> -> vector<32x128xf32>
    %c0_26 = arith.constant 0 : index
    %c0_27 = arith.constant 0 : index
    %59 = vector.load %arg9[%c0_26, %c0_27] : memref<1x128xf32, #tpu.memory_space<vmem>>, vector<1x128xf32>
    %60 = vector.broadcast %59 : vector<1x128xf32> to vector<32x128xf32>
    %61 = arith.mulf %58, %60 : vector<32x128xf32>
    %c0_28 = arith.constant 0 : index
    %c0_29 = arith.constant 0 : index
    %62 = vector.load %arg10[%c0_28, %c0_29] : memref<1x128xf32, #tpu.memory_space<vmem>>, vector<1x128xf32>
    %63 = vector.broadcast %62 : vector<1x128xf32> to vector<32x128xf32>
    %64 = arith.addf %61, %63 : vector<32x128xf32>
    %cst_30 = arith.constant 0.000000e+00 : f32
    %65 = vector.broadcast %cst_30 : f32 to vector<32x128xf32>
    %66 = arith.maximumf %64, %65 : vector<32x128xf32>
    %67 = arith.truncf %66 : vector<32x128xf32> to vector<32x128xbf16>
    %68 = vector.shape_cast %67 : vector<32x128xbf16> to vector<1x32x128xbf16>
    %cst_31 = arith.constant 0.000000e+00 : bf16
    %69 = vector.broadcast %cst_31 : bf16 to vector<1x3x128xbf16>
    %cst_32 = arith.constant 0.000000e+00 : bf16
    %70 = vector.broadcast %cst_32 : bf16 to vector<1x3x128xbf16>
    %71 = tpu.concatenate %69, %68, %70 in 1 : vector<1x3x128xbf16>, vector<1x32x128xbf16>, vector<1x3x128xbf16> -> vector<1x38x128xbf16>
    %72 = vector.extract_strided_slice %71 {offsets = [0, 0, 0], sizes = [1, 32, 128], strides = [1, 1, 1]} : vector<1x38x128xbf16> to vector<1x32x128xbf16>
    %73 = vector.extract_strided_slice %71 {offsets = [0, 1, 0], sizes = [1, 32, 128], strides = [1, 1, 1]} : vector<1x38x128xbf16> to vector<1x32x128xbf16>
    %74 = vector.extract_strided_slice %71 {offsets = [0, 2, 0], sizes = [1, 32, 128], strides = [1, 1, 1]} : vector<1x38x128xbf16> to vector<1x32x128xbf16>
    %75 = vector.extract_strided_slice %71 {offsets = [0, 3, 0], sizes = [1, 32, 128], strides = [1, 1, 1]} : vector<1x38x128xbf16> to vector<1x32x128xbf16>
    %76 = vector.extract_strided_slice %71 {offsets = [0, 4, 0], sizes = [1, 32, 128], strides = [1, 1, 1]} : vector<1x38x128xbf16> to vector<1x32x128xbf16>
    %77 = vector.extract_strided_slice %71 {offsets = [0, 5, 0], sizes = [1, 32, 128], strides = [1, 1, 1]} : vector<1x38x128xbf16> to vector<1x32x128xbf16>
    %78 = vector.extract_strided_slice %71 {offsets = [0, 6, 0], sizes = [1, 32, 128], strides = [1, 1, 1]} : vector<1x38x128xbf16> to vector<1x32x128xbf16>
    %79 = tpu.concatenate %72, %73, %74, %75, %76, %77, %78 in 2 : vector<1x32x128xbf16>, vector<1x32x128xbf16>, vector<1x32x128xbf16>, vector<1x32x128xbf16>, vector<1x32x128xbf16>, vector<1x32x128xbf16>, vector<1x32x128xbf16> -> vector<1x32x896xbf16>
    %80 = vector.shape_cast %79 : vector<1x32x896xbf16> to vector<32x896xbf16>
    %c0_33 = arith.constant 0 : index
    %c0_34 = arith.constant 0 : index
    %81 = vector.load %arg11[%c0_33, %c0_34] : memref<896x192xbf16, #tpu.memory_space<vmem>>, vector<896x192xbf16>
    %cst_35 = arith.constant dense<0.000000e+00> : vector<32x192xf32>
    %82 = tpu.matmul %80, %81, %cst_35 {dimension_numbers = #tpu.dot_dimension_numbers<[1], [0], [0], [1], [0, 0, 1, 1], [], []>} : vector<32x896xbf16>, vector<896x192xbf16>, vector<32x192xf32> -> vector<32x192xf32>
    %c0_36 = arith.constant 0 : index
    %c0_37 = arith.constant 0 : index
    %83 = vector.load %arg12[%c0_36, %c0_37] : memref<1x192xf32, #tpu.memory_space<vmem>>, vector<1x192xf32>
    %84 = vector.broadcast %83 : vector<1x192xf32> to vector<32x192xf32>
    %85 = arith.mulf %82, %84 : vector<32x192xf32>
    %c0_38 = arith.constant 0 : index
    %c0_39 = arith.constant 0 : index
    %86 = vector.load %arg13[%c0_38, %c0_39] : memref<1x192xf32, #tpu.memory_space<vmem>>, vector<1x192xf32>
    %87 = vector.broadcast %86 : vector<1x192xf32> to vector<32x192xf32>
    %88 = arith.addf %85, %87 : vector<32x192xf32>
    %cst_40 = arith.constant 0.000000e+00 : f32
    %89 = vector.broadcast %cst_40 : f32 to vector<32x192xf32>
    %90 = arith.maximumf %88, %89 : vector<32x192xf32>
    %91 = vector.extract_strided_slice %9 {offsets = [0, 512], sizes = [32, 192], strides = [1, 1]} : vector<32x768xf32> to vector<32x192xf32>
    %92 = vector.shape_cast %91 : vector<32x192xf32> to vector<1x32x192xf32>
    %cst_41 = arith.constant 0.000000e+00 : f32
    %93 = vector.broadcast %cst_41 : f32 to vector<1x1x192xf32>
    %cst_42 = arith.constant 0.000000e+00 : f32
    %94 = vector.broadcast %cst_42 : f32 to vector<1x1x192xf32>
    %95 = tpu.concatenate %93, %92, %94 in 1 : vector<1x1x192xf32>, vector<1x32x192xf32>, vector<1x1x192xf32> -> vector<1x34x192xf32>
    %96 = vector.extract_strided_slice %95 {offsets = [0, 0, 0], sizes = [1, 32, 192], strides = [1, 1, 1]} : vector<1x34x192xf32> to vector<1x32x192xf32>
    %97 = vector.extract_strided_slice %95 {offsets = [0, 1, 0], sizes = [1, 32, 192], strides = [1, 1, 1]} : vector<1x34x192xf32> to vector<1x32x192xf32>
    %98 = arith.addf %96, %97 : vector<1x32x192xf32>
    %99 = vector.extract_strided_slice %95 {offsets = [0, 2, 0], sizes = [1, 32, 192], strides = [1, 1, 1]} : vector<1x34x192xf32> to vector<1x32x192xf32>
    %100 = arith.addf %98, %99 : vector<1x32x192xf32>
    %101 = tpu.iota {dimensions = array<i32: 1>} : vector<1x32x1xi32>
    %c1_i32 = arith.constant 1 : i32
    %102 = vector.broadcast %c1_i32 : i32 to vector<1x32x1xi32>
    %103 = arith.cmpi sge, %101, %102 : vector<1x32x1xi32>
    %cst_43 = arith.constant 1.000000e+00 : f32
    %cst_44 = arith.constant 0.000000e+00 : f32
    %104 = vector.broadcast %cst_43 : f32 to vector<1x32x1xf32>
    %105 = vector.broadcast %cst_44 : f32 to vector<1x32x1xf32>
    %106 = arith.select %103, %104, %105 : vector<1x32x1xi1>, vector<1x32x1xf32>
    %cst_45 = arith.constant 1.000000e+00 : f32
    %107 = vector.broadcast %cst_45 : f32 to vector<1x32x1xf32>
    %108 = arith.addf %107, %106 : vector<1x32x1xf32>
    %c31_i32 = arith.constant 31 : i32
    %109 = vector.broadcast %c31_i32 : i32 to vector<1x32x1xi32>
    %110 = arith.cmpi slt, %101, %109 : vector<1x32x1xi32>
    %cst_46 = arith.constant 1.000000e+00 : f32
    %cst_47 = arith.constant 0.000000e+00 : f32
    %111 = vector.broadcast %cst_46 : f32 to vector<1x32x1xf32>
    %112 = vector.broadcast %cst_47 : f32 to vector<1x32x1xf32>
    %113 = arith.select %110, %111, %112 : vector<1x32x1xi1>, vector<1x32x1xf32>
    %114 = arith.addf %108, %113 : vector<1x32x1xf32>
    %cst_48 = arith.constant 1.000000e+00 : f32
    %115 = vector.broadcast %cst_48 : f32 to vector<1x32x1xf32>
    %116 = arith.divf %115, %114 : vector<1x32x1xf32>
    %117 = vector.broadcast %116 : vector<1x32x1xf32> to vector<1x32x192xf32>
    %118 = arith.mulf %100, %117 : vector<1x32x192xf32>
    %cst_49 = arith.constant 0.000000e+00 : f32
    %119 = vector.broadcast %cst_49 : f32 to vector<1x32x192xf32>
    %120 = arith.maximumf %118, %119 : vector<1x32x192xf32>
    %121 = vector.shape_cast %120 : vector<1x32x192xf32> to vector<32x192xf32>
    %122 = tpu.concatenate %12, %39, %90, %121 in 1 : vector<32x192xf32>, vector<32x192xf32>, vector<32x192xf32>, vector<32x192xf32> -> vector<32x768xf32>
    %123 = vector.shape_cast %122 : vector<32x768xf32> to vector<1x32x768xf32>
    %c0_50 = arith.constant 0 : index
    %c0_51 = arith.constant 0 : index
    %c0_52 = arith.constant 0 : index
    %124 = vector.load %arg14[%c0_50, %c0_51, %c0_52] : memref<1x32x768xf32, #tpu.memory_space<vmem>>, vector<1x32x768xf32>
    tpu.vector_store %arg14[%c0_50, %c0_51, %c0_52], %123 {strides = array<i32>} : memref<1x32x768xf32, #tpu.memory_space<vmem>>, vector<1x32x768xf32>,
    return
  }
  func.func @transform_0(%arg0: i32) -> (i32, i32, i32) {
    %c0_i32 = arith.constant 0 : i32
    %c0_i32_0 = arith.constant 0 : i32
    %c0_i32_1 = arith.constant 0 : i32
    return %arg0, %c0_i32, %c0_i32_0 : i32, i32, i32
  }
  func.func @transform_1(%arg0: i32) -> (i32, i32) {
    %c0_i32 = arith.constant 0 : i32
    %c0_i32_0 = arith.constant 0 : i32
    %c0_i32_1 = arith.constant 0 : i32
    return %c0_i32, %c0_i32_0 : i32, i32
  }
  func.func @transform_2(%arg0: i32) -> (i32, i32) {
    %c0_i32 = arith.constant 0 : i32
    %c0_i32_0 = arith.constant 0 : i32
    %c0_i32_1 = arith.constant 0 : i32
    return %c0_i32, %c0_i32_0 : i32, i32
  }
  func.func @transform_3(%arg0: i32) -> (i32, i32) {
    %c0_i32 = arith.constant 0 : i32
    %c0_i32_0 = arith.constant 0 : i32
    %c0_i32_1 = arith.constant 0 : i32
    return %c0_i32, %c0_i32_0 : i32, i32
  }
  func.func @transform_4(%arg0: i32) -> (i32, i32) {
    %c0_i32 = arith.constant 0 : i32
    %c0_i32_0 = arith.constant 0 : i32
    %c0_i32_1 = arith.constant 0 : i32
    return %c0_i32, %c0_i32_0 : i32, i32
  }
  func.func @transform_5(%arg0: i32) -> (i32, i32) {
    %c0_i32 = arith.constant 0 : i32
    %c0_i32_0 = arith.constant 0 : i32
    %c0_i32_1 = arith.constant 0 : i32
    return %c0_i32, %c0_i32_0 : i32, i32
  }
  func.func @transform_6(%arg0: i32) -> (i32, i32) {
    %c0_i32 = arith.constant 0 : i32
    %c0_i32_0 = arith.constant 0 : i32
    %c0_i32_1 = arith.constant 0 : i32
    return %c0_i32, %c0_i32_0 : i32, i32
  }
  func.func @transform_7(%arg0: i32) -> (i32, i32) {
    %c0_i32 = arith.constant 0 : i32
    %c0_i32_0 = arith.constant 0 : i32
    %c0_i32_1 = arith.constant 0 : i32
    return %c0_i32, %c0_i32_0 : i32, i32
  }
  func.func @transform_8(%arg0: i32) -> (i32, i32) {
    %c0_i32 = arith.constant 0 : i32
    %c0_i32_0 = arith.constant 0 : i32
    %c0_i32_1 = arith.constant 0 : i32
    return %c0_i32, %c0_i32_0 : i32, i32
  }
  func.func @transform_9(%arg0: i32) -> (i32, i32) {
    %c0_i32 = arith.constant 0 : i32
    %c0_i32_0 = arith.constant 0 : i32
    %c0_i32_1 = arith.constant 0 : i32
    return %c0_i32, %c0_i32_0 : i32, i32
  }
  func.func @transform_10(%arg0: i32) -> (i32, i32) {
    %c0_i32 = arith.constant 0 : i32
    %c0_i32_0 = arith.constant 0 : i32
    %c0_i32_1 = arith.constant 0 : i32
    return %c0_i32, %c0_i32_0 : i32, i32
  }
  func.func @transform_11(%arg0: i32) -> (i32, i32) {
    %c0_i32 = arith.constant 0 : i32
    %c0_i32_0 = arith.constant 0 : i32
    %c0_i32_1 = arith.constant 0 : i32
    return %c0_i32, %c0_i32_0 : i32, i32
  }
  func.func @transform_12(%arg0: i32) -> (i32, i32) {
    %c0_i32 = arith.constant 0 : i32
    %c0_i32_0 = arith.constant 0 : i32
    %c0_i32_1 = arith.constant 0 : i32
    return %c0_i32, %c0_i32_0 : i32, i32
  }
  func.func @transform_13(%arg0: i32) -> (i32, i32, i32) {
    %c0_i32 = arith.constant 0 : i32
    %c0_i32_0 = arith.constant 0 : i32
    %c0_i32_1 = arith.constant 0 : i32
    return %arg0, %c0_i32, %c0_i32_0 : i32, i32, i32
  }
}

</mosaic_0001>

<bundles_post_ra>
// kernel: inception_c_forward.1
= control target key start
LH: loop header
LB: loop body
LE: loop exit
PB: predicated region body
PF: predicated region fallthrough
CT: control target
= control target key end

     0   :  { %18 = vsyncpa [#allocation3], 0  ;;  %s7069_s0 = inlined_call_operand.vmem [shape: bf16[2,32,128], index: 0, kind: input, shape index: {}]   ;;  %s7070_s1 = inlined_call_operand.vmem [shape: bf16[128,768], index: 1, kind: input, shape index: {}]   ;;  %s7071_s2 = inlined_call_operand.vmem [shape: f32[1,768], index: 2, kind: input, shape index: {}]   ;;  %s7072_s3 = inlined_call_operand.vmem [shape: f32[1,768], index: 3, kind: input, shape index: {}]   ;;  %s7073_s4 = inlined_call_operand.vmem [shape: bf16[896,192], index: 4, kind: input, shape index: {}]   ;;  %s7074_s5 = inlined_call_operand.vmem [shape: f32[1,192], index: 5, kind: input, shape index: {}]   ;;  %s7075_s6 = inlined_call_operand.vmem [shape: f32[1,192], index: 6, kind: input, shape index: {}]   ;;  %s7076_s7 = inlined_call_operand.vmem [shape: bf16[896,128], index: 7, kind: input, shape index: {}]   ;;  %s7077_s8 = inlined_call_operand.vmem [shape: f32[1,128], index: 8, kind: input, shape index: {}]   ;;  %s7078_s9 = inlined_call_operand.vmem [shape: f32[1,128], index: 9, kind: input, shape index: {}]   ;;  %s7079_s10 = inlined_call_operand.vmem [shape: bf16[896,192], index: 10, kind: input, shape index: {}]   ;;  %s7080_s11 = inlined_call_operand.vmem [shape: f32[1,192], index: 11, kind: input, shape index: {}]   ;;  %s7081_s12 = inlined_call_operand.vmem [shape: f32[1,192], index: 12, kind: input, shape index: {}]   ;;  %s7082_s13 = inlined_call_operand.hbm [shape: f32[2,32,768], index: 13, kind: output, shape index: {}]  }
   0x1   :  { %20 = vsyncpa [#allocation3 + $0x1], 0  ;;  %s5388_s25 = smov 0   ;;  %s5390_s26 = smov 0  }
   0x2   :  { %s5392_s27 = smov 0   ;;  %s5394_s28 = smov 0  }
   0x3 LB: > { %7088 = sst [smem:[#allocation5_spill]] %s5306_s27  ;;  %s5409_s29 = sadd.s32 4294967295, %s5310_s28   ;;  %s5310_s28 = sphi %s5394_s28, %s7098_s28   ;;  %s5306_s27 = sphi %s5392_s27, %s7100_s27   ;;  %s5302_s26 = sphi %s5390_s26, %s7102_s26   ;;  %s5298_s25 = sphi %s5388_s25, %s7101_s25  }
   0x4   : > { %s4210_s30 = sadd.s32 4294967294, %s5310_s28   ;;  %s5413_s14 = sadd.s32 1, %s5310_s28  }
   0x5   : > { %7089 = sst [smem:[#allocation6_spill]] %s5413_s14  ;;  %s311_s15 = sadd.s32 1, %s5306_s27 }
   0x6   : > { %s308_s16 = ssub.s32 %s5310_s28, %s5413_s14  ;;  %p321_p0 = scmp.ne.s32.totalorder %s5306_s27, %s5302_s26 }
   0x7   : > { %p309_p1 = scmp.eq.s32.totalorder %s308_s16, 0  ;;  %p322_p2 = scmp.eq.s32.totalorder %s5409_s29, 1 }
   0x8   : > { %p327_p3 = scmp.ne.s32.totalorder %s5302_s26, %s5298_s25  ;;  %p328_p4 = scmp.eq.s32.totalorder %s4210_s30, 1 }
   0x9   : > { %s5424_s17 = scalar_select %p309_p1, %s5306_s27, %s311_s15  }
   0xa   : > { %p5426_p5 = por %p322_p2, %p321_p0  ;;  %p5430_p6 = por %p328_p4, %p327_p3 }
   0xb   : > { %7090 = sst [smem:[#allocation7_spill]] %s5424_s17  ;;  %p4213_p7 = scmp.ge.s32.totalorder %s5310_s28, 1 }
   0xc   : > { %s7092_s19 = scalar_select %p5430_p6, 1, 0 }
   0xd   : > { %p390_p8 = scmp.lt.s32.totalorder %s5310_s28, 3 }
   0xe   : > { %7093 = sst [smem:[#allocation8_spill]] %s7092_s19 }
   0xf   : > { %p391_p9 = pnand %p4213_p7, %p390_p8 }
  0x10   : > { %v4776_v0 = vld [vmem:[%s7070_s1 + $0xc] ss:$24 sps:$4 sm:$0xff] (!%p391_p9)   ;;  %p434_p10 = scmp.lt.s32.totalorder (!%p391_p9), %s5409_s29, 1  ;;  %v4778_v1 = vld [vmem:[%s7070_s1 + $0x8] ss:$24 sps:$4 sm:$0xff] (!%p391_p9)   ;;  %v5312_v2 = vmov (!%p391_p9), 0  }
  0x11   : > { %394 = sbr.rel (%p391_p9) target bundleno = 967 (0x3c7), region = 72  ;;  %829 = vmatprep.mubr.bf16.mxu1 (!%p391_p9), %v5312_v2  ;;  %776 = vmatprep.mubr.bf16.mxu0 (!%p391_p9), %v5312_v2  ;;  %v4779_v3 = vld [vmem:[%s7070_s1 + $0x3c] ss:$24 sps:$4 sm:$0xff] (!%p391_p9)   ;;  %v4781_v4 = vld [vmem:[%s7070_s1 + $0x38] ss:$24 sps:$4 sm:$0xff] (!%p391_p9)   ;;  %vm1050_vm1 = vcmask (!%p391_p9), 1041408  }
  0x12   : > { %797 = vmatprep.subr.bf16.mxu1 (!%p391_p9), %v4776_v0  ;;  %v4782_v5 = vld [vmem:[%s7070_s1 + $0x6c] ss:$24 sps:$4 sm:$0xff] (!%p391_p9)   ;;  %v4784_v6 = vld [vmem:[%s7070_s1 + $0x68] ss:$24 sps:$4 sm:$0xff] (!%p391_p9)   ;;  %v4785_v7 = vld [vmem:[%s7070_s1 + $0x9c] ss:$24 sps:$4 sm:$0xff] (!%p391_p9)  }
  0x13   : > { %798 = vmatpush1.bf16.msra.mxu1 (!%p391_p9), %v4778_v1  ;;  %v4787_v8 = vld [vmem:[%s7070_s1 + $0x98] ss:$24 sps:$4 sm:$0xff] (!%p391_p9)   ;;  %v4788_v9 = vld [vmem:[%s7070_s1 + $0xcc] ss:$24 sps:$4 sm:$0xff] (!%p391_p9)   ;;  %v4790_v13 = vld [vmem:[%s7070_s1 + $0xc8] ss:$24 sps:$4 sm:$0xff] (!%p391_p9)  }
  0x14   : > { %799 = vmatprep.subr.bf16.mxu1 (!%p391_p9), %v4779_v3  ;;  %v4802_v10 = vld [vmem:[%s7070_s1 + $0x4] ss:$24 sps:$4 sm:$0xff] (!%p391_p9)   ;;  %v4804_v11 = vld [vmem:[%s7070_s1] ss:$24 sps:$4 sm:$0xff] (!%p391_p9)   ;;  %v4805_v12 = vld [vmem:[%s7070_s1 + $0x34] ss:$24 sps:$4 sm:$0xff] (!%p391_p9)  }
  0x15   : > { %744 = vmatprep.subr.bf16.mxu0 (!%p391_p9), %v4802_v10  ;;  %v4791_v14 = vld [vmem:[%s7070_s1 + $0xfc] ss:$24 sps:$4 sm:$0xff] (!%p391_p9)   ;;  %v4807_v15 = vld [vmem:[%s7070_s1 + $0x30] ss:$24 sps:$4 sm:$0xff] (!%p391_p9)   ;;  %v4794_v18 = vld [vmem:[%s7070_s1 + $0x12c] ss:$24 sps:$4 sm:$0xff] (!%p391_p9)  }
  0x16   : > { %745 = vmatpush1.bf16.msra.mxu0 (!%p391_p9), %v4804_v11  ;;  %v4808_v16 = vld [vmem:[%s7070_s1 + $0x64] ss:$24 sps:$4 sm:$0xff] (!%p391_p9)   ;;  %v4793_v17 = vld [vmem:[%s7070_s1 + $0xf8] ss:$24 sps:$4 sm:$0xff] (!%p391_p9)   ;;  %v4811_v20 = vld [vmem:[%s7070_s1 + $0x94] ss:$24 sps:$4 sm:$0xff] (!%p391_p9)  }
  0x17   : > { %800 = vmatpush1.bf16.msra.mxu1 (!%p391_p9), %v4781_v4  ;;  %746 = vmatprep.subr.bf16.mxu0 (!%p391_p9), %v4805_v12  ;;  %v4810_v19 = vld [vmem:[%s7070_s1 + $0x60] ss:$24 sps:$4 sm:$0xff] (!%p391_p9)   ;;  %v4797_v22 = vld [vmem:[%s7070_s1 + $0x15c] ss:$24 sps:$4 sm:$0xff] (!%p391_p9)   ;;  %v4813_v23 = vld [vmem:[%s7070_s1 + $0x90] ss:$24 sps:$4 sm:$0xff] (!%p391_p9)  }
  0x18   : > { %s435_s15 = scalar_select %p434_p10, %s5409_s29, 1  ;;  %801 = vmatprep.subr.bf16.mxu1 %v4782_v5  ;;  %v4796_v21 = vld [vmem:[%s7070_s1 + $0x128] ss:$24 sps:$4 sm:$0xff]   ;;  %v4814_v24 = vld [vmem:[%s7070_s1 + $0xc4] ss:$24 sps:$4 sm:$0xff]   ;;  %vm1079_vm4 = vcmask 1046528  }
  0x19   : > { %v4799_v25 = vld [vmem:[%s7070_s1 + $0x158] ss:$24 sps:$4 sm:$0xff]   ;;  %v4817_v27 = vld [vmem:[%s7070_s1 + $0xf4] ss:$24 sps:$4 sm:$0xff]   ;;  %v4838_v30 = vld [vmem:[%s7073_s4] ss:$8 sps:$4 sm:$0xff]  }
  0x1a   : > { %s4551_s23 = sshll.u32 %s435_s15, 4  ;;  %747 = vmatpush1.bf16.msra.mxu0 %v4807_v15  ;;  %v4816_v26 = vld [vmem:[%s7070_s1 + $0xc0] ss:$24 sps:$4 sm:$0xff]   ;;  %v4840_v28 = vld [vmem:[%s7073_s4 + $0x4] ss:$8 sps:$4 sm:$0xff]   ;;  %v4888_v15 = vld [vmem:[%s7076_s7 + $0x10] sm:$0xff]  }
  0x1b   : > { %s5464_s16 = scalar_lea.vmem %s7069_s0, %s4551_s23  ;;  %802 = vmatpush1.bf16.msra.mxu1 %v4784_v6  ;;  %748 = vmatprep.subr.bf16.mxu0 %v4808_v16  ;;  %v4819_v31 = vld [vmem:[%s7070_s1 + $0xf0] ss:$24 sps:$4 sm:$0xff]   ;;  %v4846_v32 = vld [vmem:[%s7073_s4 + $0x14] ss:$8 sps:$4 sm:$0xff]   ;;  %v4822_v35 = vld [vmem:[%s7070_s1 + $0x120] ss:$24 sps:$4 sm:$0xff]  }
  0x1c   : > { %803 = vmatprep.subr.bf16.mxu1 %v4785_v7  ;;  %v5530_v29 = vld [vmem:[%s5464_s16] sm:$0xff]   ;;  %v4844_v34 = vld [vmem:[%s7073_s4 + $0x10] ss:$8 sps:$4 sm:$0xff]   ;;  %v4823_v37 = vld [vmem:[%s7070_s1 + $0x154] ss:$24 sps:$4 sm:$0xff]   ;;  %vm1103_vm7 = vcmask 1045504  }
  0x1d   : > { %v4820_v33 = vld [vmem:[%s7070_s1 + $0x124] ss:$24 sps:$4 sm:$0xff]   ;;  %v5559_v38 = vld [vmem:[%s5464_s16 + $0x8] sm:$0xff]   ;;  %v4856_v43 = vld [vmem:[%s7073_s4 + $0x30] ss:$8 sps:$4 sm:$0xff]   ;;  %vm1125_vm8 = vcmask 1044480  }
  0x1e   : > { %749 = vmatpush1.bf16.msra.mxu0 %v4810_v19  ;;  %v4852_v36 = vld [vmem:[%s7073_s4 + $0x24] ss:$8 sps:$4 sm:$0xff]   ;;  %v4850_v39 = vld [vmem:[%s7073_s4 + $0x20] ss:$8 sps:$4 sm:$0xff]   ;;  %v4858_v41 = vld [vmem:[%s7073_s4 + $0x34] ss:$8 sps:$4 sm:$0xff]  }
  0x1f   : > { %804 = vmatpush1.bf16.msra.mxu1 %v4787_v8  ;;  %750 = vmatprep.subr.bf16.mxu0 %v4811_v20  ;;  %v4825_v40 = vld [vmem:[%s7070_s1 + $0x150] ss:$24 sps:$4 sm:$0xff]   ;;  %v4828_v42 = vld [vmem:[%s7070_s1 + $0x14] ss:$24 sps:$4 sm:$0xff]   ;;  %v4831_v45 = vld [vmem:[%s7070_s1 + $0x44] ss:$24 sps:$4 sm:$0xff]  }
  0x20   : > { %805 = vmatprep.subr.bf16.mxu1 %v4788_v9  ;;  %v4826_v44 = vld [vmem:[%s7070_s1 + $0x10] ss:$24 sps:$4 sm:$0xff]   ;;  %v4864_v47 = vld [vmem:[%s7073_s4 + $0x44] ss:$8 sps:$4 sm:$0xff]   ;;  %v4829_v48 = vld [vmem:[%s7070_s1 + $0x40] ss:$24 sps:$4 sm:$0xff]  }
  0x21   : > { %v4862_v46 = vld [vmem:[%s7073_s4 + $0x40] ss:$8 sps:$4 sm:$0xff]   ;;  %v4867_v49 = vld [vmem:[%s7073_s4 + $0x54] ss:$8 sps:$4 sm:$0xff]   ;;  %v4865_v51 = vld [vmem:[%s7073_s4 + $0x50] ss:$8 sps:$4 sm:$0xff]  }
  0x22   : > { %751 = vmatpush1.bf16.msra.mxu0 %v4813_v23  ;;  %v4834_v50 = vld [vmem:[%s7070_s1 + $0x74] ss:$24 sps:$4 sm:$0xff]   ;;  %v4832_v52 = vld [vmem:[%s7070_s1 + $0x70] ss:$24 sps:$4 sm:$0xff]   ;;  %v4837_v53 = vld [vmem:[%s7070_s1 + $0xa4] ss:$24 sps:$4 sm:$0xff]  }
  0x23   : > { %806 = vmatpush1.bf16.msra.mxu1 %v4790_v13  ;;  %752 = vmatprep.subr.bf16.mxu0 %v4814_v24  ;;  %v4870_v54 = vld [vmem:[%s7073_s4 + $0x64] ss:$8 sps:$4 sm:$0xff]   ;;  %v4868_v55 = vld [vmem:[%s7073_s4 + $0x60] ss:$8 sps:$4 sm:$0xff]   ;;  %v4873_v57 = vld [vmem:[%s7073_s4 + $0x74] ss:$8 sps:$4 sm:$0xff]  }
  0x24   : > { %807 = vmatprep.subr.bf16.mxu1 %v4791_v14  ;;  %v4835_v56 = vld [vmem:[%s7070_s1 + $0xa0] ss:$24 sps:$4 sm:$0xff]   ;;  %v4843_v58 = vld [vmem:[%s7070_s1 + $0xd4] ss:$24 sps:$4 sm:$0xff]   ;;  %v4841_v60 = vld [vmem:[%s7070_s1 + $0xd0] ss:$24 sps:$4 sm:$0xff]  }
  0x25   : > { %v4871_v59 = vld [vmem:[%s7073_s4 + $0x70] ss:$8 sps:$4 sm:$0xff]   ;;  %v4876_v61 = vld [vmem:[%s7073_s4 + $0x84] ss:$8 sps:$4 sm:$0xff]   ;;  %v4874_v63 = vld [vmem:[%s7073_s4 + $0x80] ss:$8 sps:$4 sm:$0xff]  }
  0x26   : > { %753 = vmatpush1.bf16.msra.mxu0 %v4816_v26  ;;  %v4849_v62 = vld [vmem:[%s7070_s1 + $0x104] ss:$24 sps:$4 sm:$0xff]   ;;  %v4847_v0 = vld [vmem:[%s7070_s1 + $0x100] ss:$24 sps:$4 sm:$0xff]   ;;  %v4855_v1 = vld [vmem:[%s7070_s1 + $0x134] ss:$24 sps:$4 sm:$0xff]  }
  0x27   : > { %808 = vmatpush1.bf16.msra.mxu1 %v4793_v17  ;;  %754 = vmatprep.subr.bf16.mxu0 %v4817_v27  ;;  %v4853_v3 = vld [vmem:[%s7070_s1 + $0x130] ss:$24 sps:$4 sm:$0xff]   ;;  %v4861_v4 = vld [vmem:[%s7070_s1 + $0x164] ss:$24 sps:$4 sm:$0xff]   ;;  %v4859_v5 = vld [vmem:[%s7070_s1 + $0x160] ss:$24 sps:$4 sm:$0xff]  }
  0x28   : > { %809 = vmatprep.subr.bf16.mxu1 %v4794_v18  ;;  %v4877_v6 = vld [vmem:[%s7076_s7 + $0x40] sm:$0xff]   ;;  %v4881_v8 = vld [vmem:[%s7073_s4 + $0x94] ss:$8 sps:$4 sm:$0xff]   ;;  %v4879_v9 = vld [vmem:[%s7073_s4 + $0x90] ss:$8 sps:$4 sm:$0xff]   ;;  %s7087_s17 = sand.u32 1, %s5302_s26  }
  0x29   : > { %v4878_v7 = vld [vmem:[%s7076_s7] sm:$0xff]   ;;  %v4882_v10 = vld [vmem:[%s7076_s7 + $0x48] sm:$0xff]   ;;  %v4887_v14 = vld [vmem:[%s7076_s7 + $0x50] sm:$0xff]   ;;  %vm1029_vm0 = vsmask.f32 1280  ;;  %s4730_s20 = smul.u32 192, %s7087_s17 }
  0x2a   : > { %755 = vmatpush1.bf16.msra.mxu0 %v4819_v31  ;;  %v4883_v11 = vld [vmem:[%s7076_s7 + $0x8] sm:$0xff]   ;;  %v4891_v16 = vld [vmem:[%s7073_s4 + $0xb4] ss:$8 sps:$4 sm:$0xff]   ;;  %v4889_v17 = vld [vmem:[%s7073_s4 + $0xb0] ss:$8 sps:$4 sm:$0xff]   ;;  %vm3873_vm9 = vcmask 1040384  }
  0x2b   : > { %810 = vmatpush1.bf16.msra.mxu1 %v4796_v21  ;;  %756 = vmatprep.subr.bf16.mxu0 %v4820_v33  ;;  %v4886_v12 = vld [vmem:[%s7073_s4 + $0xa4] ss:$8 sps:$4 sm:$0xff]   ;;  %v4884_v13 = vld [vmem:[%s7073_s4 + $0xa0] ss:$8 sps:$4 sm:$0xff]   ;;  %v4892_v18 = vld [vmem:[%s7076_s7 + $0x58] sm:$0xff]   ;;  %s6052_s24 = scalar_lea.vmem [#allocation2], %s4730_s20 }
  0x2c   : > { %811 = vmatprep.subr.bf16.mxu1 %v4797_v22  ;;  %v4893_v19 = vld [vmem:[%s7076_s7 + $0x18] sm:$0xff]   ;;  %v4896_v20 = vld [vmem:[%s7073_s4 + $0xc4] ss:$8 sps:$4 sm:$0xff]   ;;  %v4894_v21 = vld [vmem:[%s7073_s4 + $0xc0] ss:$8 sps:$4 sm:$0xff]   ;;  %s5314_s22 = smov 64  }
  0x2d   : > { %v4897_v22 = vld [vmem:[%s7076_s7 + $0x60] sm:$0xff]   ;;  %v4901_v24 = vld [vmem:[%s7073_s4 + $0xd4] ss:$8 sps:$4 sm:$0xff]   ;;  %v4902_v26 = vld [vmem:[%s7076_s7 + $0x68] sm:$0xff]   ;;  %vm1054_vm3 = vsmask.f32 7424 }
  0x2e   : > { %757 = vmatpush1.bf16.msra.mxu0 %v4822_v35  ;;  %v4898_v23 = vld [vmem:[%s7076_s7 + $0x20] sm:$0xff]   ;;  %v4903_v27 = vld [vmem:[%s7076_s7 + $0x28] sm:$0xff]   ;;  %v4908_v31 = vld [vmem:[%s7076_s7 + $0x30] sm:$0xff]   ;;  %vm1087_vm5 = vsmask.f32 6400  ;;  %vm4053_vm12 = vcmask 523264  }
  0x2f   : > { %812 = vmatpush1.bf16.msra.mxu1 %v4799_v25  ;;  %758 = vmatprep.subr.bf16.mxu0 %v4823_v37  ;;  %v4899_v25 = vld [vmem:[%s7073_s4 + $0xd0] ss:$8 sps:$4 sm:$0xff]   ;;  %v4917_v37 = vld [vmem:[%s7076_s7 + $0xc0] sm:$0xff]   ;;  %vm5775_vm2 = vmand %vm1050_vm1, %vm1029_vm0  ;;  %vm1111_vm6 = vsmask.f32 5376  ;;  %s4731_s30 = smul.u32 3072, %s5409_s29 }
  0x30   : > { %1805 = vmatprep.subr.bf16.mxu1 %v4840_v28  ;;  %v4906_v28 = vld [vmem:[%s7073_s4 + $0xe4] ss:$8 sps:$4 sm:$0xff]   ;;  %v4909_v33 = vld [vmem:[%s7073_s4 + $0xf0] ss:$8 sps:$4 sm:$0xff]   ;;  %s4148_s14 = sshll.u32 %s6052_s24, 4  ;;  %s7096_s23 = sand.u32 1, %s5302_s26   ;;  %s7014_s14 = int_to_ptr.vmem [resolvable:$true] %s4148_s14 }
  0x31   : > { %v4913_v35 = vld [vmem:[%s7076_s7 + $0x38] sm:$0xff]   ;;  %s7021_s29 = scalar_lea.hbm %s7082_s13, %s4731_s30  ;;  %s7028_s16 = scalar_lea.sflag [#allocation3], %s7096_s23 }
  0x32   : > { %830 = vmatmul.mubr.bf16.vlgmr.msra.gmra.mrb[0].mxu1 %v5530_v29  ;;  %759 = vmatpush1.bf16.msra.mxu0 %v4825_v40  ;;  %s5248_s21 = scalar_lea.vmem %s7014_s14, 3072  ;;  %s5315_s20 = smov [#allocation2]  }
  0x33   : > { %839 = vmatprep.mubr.bf16.mxu1 %v5312_v2  ;;  %1806 = vmatpush1.bf16.msra.mxu1 %v4838_v30  ;;  %v4907_v30 = vld [vmem:[%s7076_s7 + $0x70] sm:$0xff]   ;;  %p5249_p11 = scmp.ne.s32.totalorder %s7014_s14, %s5248_s21  ;;  %s5252_s15 = sshll.u32 %s5315_s20, 4  ;;  %s5253_s15 = int_to_ptr.vmem [resolvable:$false] %s5252_s15 }
  0x34   : > { %1807 = vmatprep.subr.bf16.mxu1 %v4846_v32  ;;  %850 = vmatprep.subr.bf16.mxu0 %v4828_v42  ;;  %v4911_v32 = vld [vmem:[%s7073_s4 + $0xf4] ss:$8 sps:$4 sm:$0xff]   ;;  %s5254_s27 = scalar_lea.vmem %s5253_s15, 6144  ;;  %p5255_p0 = scmp.lt.s32.totalorder %s7014_s14, %s5253_s15 }
  0x35   : > { %777 = vmatmul.mubr.bf16.vlgmr.msra.gmra.mrb[0].mxu0 %v5530_v29  ;;  %p5250_p12 = pnand %p5249_p11, %p5426_p5  ;;  %p5256_p1 = scmp.lt.s32.totalorder %s5254_s27, %s5248_s21 }
  0x36   : > { %851 = vmatpush1.bf16.msra.mxu0 %v4826_v44  ;;  %786 = vmatprep.mubr.bf16.mxu0 %v5312_v2 }
  0x37   : > { %1808 = vmatpush1.bf16.msra.mxu1 %v4844_v34  ;;  %852 = vmatprep.subr.bf16.mxu0 %v4831_v45  ;;  %v4912_v34 = vld [vmem:[%s7076_s7 + $0x78] sm:$0xff]   ;;  %p5251_p13 = pneg %p5250_p12  ;;  %p5257_p2 = por %p5256_p1, %p5255_p0 }
  0x38   : > { %1809 = vmatprep.subr.bf16.mxu1 %v4852_v36  ;;  %v4916_v36 = vld [vmem:[%s7073_s4 + $0x104] ss:$8 sps:$4 sm:$0xff]  }
  0x39   : > { %p5258_p3 = pnand %p5257_p2, %p5251_p13 }
  0x3a   : > { %840 = vmatmul.mubr.bf16.gmra.mrb[4].mxu1 %v5559_v38  ;;  %853 = vmatpush1.bf16.msra.mxu0 %v4829_v48 }
  0x3b   : > { %1810 = vmatpush1.bf16.msra.mxu1 %v4850_v39  ;;  %854 = vmatprep.subr.bf16.mxu0 %v4834_v50 }
  0x3c   : > { %1811 = vmatprep.subr.bf16.mxu1 %v4858_v41  ;;  %v5761_v41 = vld [vmem:[%s7071_s2] sm:$0x3f] }
  0x3d   : > { %787 = vmatmul.mubr.bf16.gmra.mrb[4].mxu0 %v5559_v38 }
  0x3e   : > { %855 = vmatpush1.bf16.msra.mxu0 %v4832_v52  ;;  %882 = vmatprep.mubr.bf16.mxu0 %v5312_v2 }
  0x3f   : > { %1812 = vmatpush1.bf16.msra.mxu1 %v4856_v43  ;;  %856 = vmatprep.subr.bf16.mxu0 %v4837_v53  ;;  %v5767_v43 = vld [vmem:[%s7072_s3] sm:$0x3f] }
  0x40   : > { %1813 = vmatprep.subr.bf16.mxu1 %v4864_v47 }
  0x42   : > { %857 = vmatpush1.bf16.msra.mxu0 %v4835_v56 }
  0x43   : > { %1814 = vmatpush1.bf16.msra.mxu1 %v4862_v46  ;;  %858 = vmatprep.subr.bf16.mxu0 %v4843_v58 }
  0x44   : > { %1815 = vmatprep.subr.bf16.mxu1 %v4867_v49 }
  0x46   : > { %859 = vmatpush1.bf16.msra.mxu0 %v4841_v60 }
  0x47   : > { %1816 = vmatpush1.bf16.msra.mxu1 %v4865_v51  ;;  %860 = vmatprep.subr.bf16.mxu0 %v4849_v62 }
  0x48   : > { %1817 = vmatprep.subr.bf16.mxu1 %v4870_v54 }
  0x4a   : > { %861 = vmatpush1.bf16.msra.mxu0 %v4847_v0 }
  0x4b   : > { %1818 = vmatpush1.bf16.msra.mxu1 %v4868_v55  ;;  %862 = vmatprep.subr.bf16.mxu0 %v4855_v1 }
  0x4c   : > { %1819 = vmatprep.subr.bf16.mxu1 %v4873_v57 }
  0x4e   : > { %863 = vmatpush1.bf16.msra.mxu0 %v4853_v3 }
  0x4f   : > { %1820 = vmatpush1.bf16.msra.mxu1 %v4871_v59  ;;  %864 = vmatprep.subr.bf16.mxu0 %v4861_v4 }
  0x50   : > { %1821 = vmatprep.subr.bf16.mxu1 %v4876_v61 }
  0x52   : > { %865 = vmatpush1.bf16.msra.mxu0 %v4859_v5 }
  0x53   : > { %1822 = vmatpush1.bf16.msra.mxu1 %v4874_v63  ;;  %4552 = vmatprep.subr.bf16.mxu0 %v4877_v6 }
  0x54   : > { %1823 = vmatprep.subr.bf16.mxu1 %v4881_v8 }
  0x55   : > { %883 = vmatmul.mubr.bf16.vlgmr.msra.gmra.mrb[8].mxu0 %v5530_v29  ;;  %v4904_v29 = vld [vmem:[%s7073_s4 + $0xe0] ss:$8 sps:$4 sm:$0xff]  }
  0x56   : > { %892 = vmatprep.mubr.bf16.mxu0 %v5312_v2  ;;  %4553 = vmatpush3.bf16.msra.mxu0 %v4878_v7 }
  0x57   : > { %1824 = vmatpush1.bf16.msra.mxu1 %v4879_v9  ;;  %4554 = vmatprep.subr.bf16.mxu0 %v4882_v10 }
  0x58   : > { %1825 = vmatprep.subr.bf16.mxu1 %v4886_v12 }
  0x5a   : > { %4555 = vmatpush3.bf16.msra.mxu0 %v4883_v11 }
  0x5b   : > { %1826 = vmatpush1.bf16.msra.mxu1 %v4884_v13  ;;  %4556 = vmatprep.subr.bf16.mxu0 %v4887_v14 }
  0x5c   : > { %1827 = vmatprep.subr.bf16.mxu1 %v4891_v16 }
  0x5d   : > { %893 = vmatmul.mubr.bf16.gmra.mrb[12].mxu0 %v5559_v38  ;;  %v905_v38 = vlaneseq }
  0x5e   : > { %4557 = vmatpush3.bf16.msra.mxu0 %v4888_v15 }
  0x5f   : > { %1828 = vmatpush1.bf16.msra.mxu1 %v4889_v17  ;;  %4558 = vmatprep.subr.bf16.mxu0 %v4892_v18  ;;  %v5755_v39 = vshrl.u32 %v905_v38, 7 }
  0x60   : > { %1829 = vmatprep.subr.bf16.mxu1 %v4896_v20 }
  0x61   : > { %v915_v40 = vsub.s32 2, %v5755_v39  ;;  %v919_v42 = vsub.s32 3, %v5755_v39  ;;  %vm3981_vm10 = vcmp.ge.s32.totalorder %v5755_v39, 1 }
  0x62   : > { %4559 = vmatpush3.bf16.msra.mxu0 %v4893_v19 }
  0x63   : > { %1830 = vmatpush1.bf16.msra.mxu1 %v4894_v21  ;;  %4560 = vmatprep.subr.bf16.mxu0 %v4897_v22  ;;  %v916_v44 = vrot.slane %v5761_v41, %v915_v40  ;;  %v920_v45 = vrot.slane %v5761_v41, %v919_v42  ;;  %v972_v46 = vrot.slane %v5767_v43, %v915_v40 }
  0x64   : > { %1831 = vmatprep.subr.bf16.mxu1 %v4901_v24  ;;  %v976_v48 = vrot.slane %v5767_v43, %v919_v42 }
  0x66   : > { %4561 = vmatpush3.bf16.msra.mxu0 %v4898_v23 }
  0x67   : > { %1832 = vmatpush1.bf16.msra.mxu1 %v4899_v25  ;;  %4562 = vmatprep.subr.bf16.mxu0 %v4902_v26 }
  0x68   : > { %1833 = vmatprep.subr.bf16.mxu1 %v4906_v28 }
  0x6a   : > { %4563 = vmatpush3.bf16.msra.mxu0 %v4903_v27 }
  0x6b   : > { %1834 = vmatpush1.bf16.msra.mxu1 %v4904_v29  ;;  %4564 = vmatprep.subr.bf16.mxu0 %v4907_v30 }
  0x6c   : > { %1835 = vmatprep.subr.bf16.mxu1 %v4911_v32 }
  0x6e   : > { %4565 = vmatpush3.bf16.msra.mxu0 %v4908_v31 }
  0x6f   : > { %1836 = vmatpush1.bf16.msra.mxu1 %v4909_v33  ;;  %4566 = vmatprep.subr.bf16.mxu0 %v4912_v34 }
  0x70   : > { %1858 = vmatprep.subr.bf16.mxu1 %v4916_v36 }
  0x72   : > { %4567 = vmatpush3.bf16.msra.mxu0 %v4913_v35 }
  0x73   : > { %4580 = vmatprep.subr.bf16.mxu0 %v4917_v37 }
 0x105   : > { %v831_v47 = vpop.f32.mrb[0].mxu1 }
 0x106   : > { %v937_v49 = vmul.f32 %v916_v44, %v831_v47  ;;  %v833_v50 = vpop.f32.mrb[1].mxu1 }
 0x107   : > { %v938_v51 = vmul.f32 %v920_v45, %v833_v50  ;;  %v835_v52 = vpop.f32.mrb[2].mxu1 }
 0x108   : > { %v993_v53 = vadd.f32 %v972_v46, %v937_v49  ;;  %v943_v54 = vmul.f32 %v916_v44, %v835_v52  ;;  %v837_v55 = vpop.f32.mrb[3].mxu1 }
 0x109   : > { %v994_v56 = vadd.f32 %v976_v48, %v938_v51  ;;  %v944_v57 = vmul.f32 %v920_v45, %v837_v55 }
 0x10a   : > { %v999_v58 = vadd.f32 %v972_v46, %v943_v54  ;;  %v1023_v60 = vmax.f32 %v993_v53, 0.0 }
 0x10b   : > { %v1000_v59 = vadd.f32 %v976_v48, %v944_v57  ;;  %v2065_v62 = vmax.f32 %v994_v56, 0.0 }
 0x10c   : > { %v1024_v61 = vmax.f32 %v999_v58, 0.0 }
 0x10d   : > { %v2066_v63 = vmax.f32 %v1000_v59, 0.0  ;;  %v841_v0 = vpop.f32.mrb[4].mxu1 }
 0x10e   : > { %v1027_v1 = vpack.c.bf16 %v1024_v61, %v1023_v60  ;;  %v949_v3 = vmul.f32 %v916_v44, %v841_v0  ;;  %v843_v4 = vpop.f32.mrb[5].mxu1 }
 0x10f   : > { %v2069_v5 = vpack.c.bf16 %v2066_v63, %v2065_v62  ;;  %v950_v6 = vmul.f32 %v920_v45, %v843_v4  ;;  %v845_v7 = vpop.f32.mrb[6].mxu1 }
 0x110   : > { %v1031_v8 = vshrl.u32 %v1027_v1, 16  ;;  %v1034_v9 = vshll.u32 %v1027_v1, 16  ;;  %v1005_v10 = vadd.f32 %v972_v46, %v949_v3  ;;  %v955_v11 = vmul.f32 %v916_v44, %v845_v7  ;;  %v847_v12 = vpop.f32.mrb[7].mxu1 }
 0x111   : > { %v2072_v13 = vshrl.u32 %v2069_v5, 16  ;;  %v2075_v14 = vshll.u32 %v2069_v5, 16  ;;  %v1006_v15 = vadd.f32 %v976_v48, %v950_v6  ;;  %v956_v16 = vmul.f32 %v920_v45, %v847_v12 }
 0x112   : > { %v1033_v17 = vrot.slane %v1031_v8, 6  ;;  %v1036_v18 = vrot.slane %v1034_v9, 7  ;;  %v1011_v19 = vadd.f32 %v972_v46, %v955_v11  ;;  %v1025_v25 = vmax.f32 %v1005_v10, 0.0 }
 0x113   : > { %v2074_v21 = vrot.slane %v2072_v13, 6  ;;  %v2077_v22 = vrot.slane %v2075_v14, 7  ;;  %v1012_v23 = vadd.f32 %v976_v48, %v956_v16  ;;  %v2067_v28 = vmax.f32 %v1006_v15, 0.0  ;;  %v4914_v16 = vld [vmem:[%s7073_s4 + $0x100] ss:$8 sps:$4 sm:$0xff]  }
 0x114   : > { %v1037_v24 = vor.u32 %v1036_v18, %v1033_v17  ;;  %v1026_v26 = vmax.f32 %v1011_v19, 0.0 }
 0x115   : > { %v2078_v27 = vor.u32 %v2077_v22, %v2074_v21  ;;  %v2068_v29 = vmax.f32 %v1012_v23, 0.0 }
 0x116   : > { %v5781_v30 = vsel %vm5775_vm2, 0, %v1037_v24  ;;  %v1028_v31 = vpack.c.bf16 %v1026_v26, %v1025_v25 }
 0x117   : > { %v5785_v32 = vsel %vm5775_vm2, 0, %v2078_v27  ;;  %v2070_v33 = vpack.c.bf16 %v2068_v29, %v2067_v28  ;;  %v5788_v34 = vshrl.u32 %v5781_v30, 16  ;;  %v5791_v35 = vshll.u32 %v5781_v30, 16  ;;  %v4918_v28 = vld [vmem:[%s7076_s7 + $0x80] sm:$0xff]  }
 0x118   : > { %v1039_v36 = vshrl.u32 %v1028_v31, 16  ;;  %v1042_v37 = vshll.u32 %v1028_v31, 16  ;;  %v5794_v38 = vshrl.u32 %v5785_v32, 16  ;;  %v5797_v40 = vshll.u32 %v5785_v32, 16 }
 0x119   : > { %v2080_v42 = vshrl.u32 %v2070_v33, 16  ;;  %v2083_v44 = vshll.u32 %v2070_v33, 16  ;;  %v1060_v45 = vrot.slane %v5791_v35, 1  ;;  %v1088_v46 = vrot.slane %v5788_v34, 1 }
 0x11a   : > { %v1041_v47 = vrot.slane %v1039_v36, 6  ;;  %v1044_v48 = vrot.slane %v1042_v37, 7  ;;  %v2098_v49 = vrot.slane %v5797_v40, 1  ;;  %v1089_v50 = vrot.slane %v5791_v35, 2  ;;  %v4922_v37 = vld [vmem:[%s7076_s7 + $0xc8] sm:$0xff]  }
 0x11b   : > { %v2082_v51 = vrot.slane %v2080_v42, 6  ;;  %v2085_v52 = vrot.slane %v2083_v44, 7  ;;  %v1061_v53 = vor.u32 %v1060_v45, %v5788_v34  ;;  %v2124_v54 = vrot.slane %v5794_v38, 1  ;;  %v4919_v45 = vld [vmem:[%s7073_s4 + $0x110] ss:$8 sps:$4 sm:$0xff]  }
 0x11c   : > { %v1045_v55 = vor.u32 %v1044_v48, %v1041_v47  ;;  %v2099_v56 = vor.u32 %v2098_v49, %v5794_v38  ;;  %v1090_v57 = vor.u32 %v1089_v50, %v1088_v46  ;;  %v2125_v58 = vrot.slane %v5797_v40, 2  ;;  %v4926_v49 = vld [vmem:[%s7073_s4 + $0x124] ss:$8 sps:$4 sm:$0xff]  }
 0x11d   : > { %v2086_v59 = vor.u32 %v2085_v52, %v2082_v51  ;;  %v2117_v60 = vrot.slane %v5785_v32, 1  ;;  %v2146_v61 = vrot.slane %v5794_v38, 2  ;;  %v2147_v62 = vrot.slane %v5797_v40, 3 }
 0x11e   : > { %v5811_v63 = vsel %vm1029_vm0, %v1037_v24, %v1045_v55  ;;  %v5815_v0 = vsel %vm5775_vm2, %v1045_v55, 0  ;;  %v2126_v1 = vor.u32 %v2125_v58, %v2124_v54  ;;  %v1080_v3 = vrot.slane %v5781_v30, 1  ;;  %v4921_v24 = vld [vmem:[%s7073_s4 + $0x114] ss:$8 sps:$4 sm:$0xff]   ;;  %v4923_v54 = vld [vmem:[%s7076_s7 + $0x88] sm:$0xff]  }
 0x11f   : > { %v5819_v4 = vsel %vm1029_vm0, %v2078_v27, %v2086_v59  ;;  %v5823_v5 = vsel %vm5775_vm2, %v2086_v59, 0  ;;  %v5826_v6 = vshll.u32 %v5811_v63, 16  ;;  %v5829_v7 = vshrl.u32 %v5811_v63, 16  ;;  %v4927_v59 = vld [vmem:[%s7076_s7 + $0xd0] sm:$0xff]  }
 0x120   : > { %v2101_v8 = vshll.u32 %v5819_v4, 16  ;;  %v5833_v9 = vshll.u32 %v5815_v0, 16  ;;  %v2105_v10 = vshrl.u32 %v5819_v4, 16  ;;  %v5837_v11 = vshll.u32 %v5823_v5, 16 }
 0x121   : > { %v1065_v12 = vrot.slane %v5826_v6, 1  ;;  %v1091_v13 = vrot.slane %v5829_v7, 1  ;;  %v1092_v14 = vrot.slane %v5826_v6, 2  ;;  %v2118_v15 = vrot.slane %v5819_v4, 1 }
 0x122   : > { %v2103_v17 = vrot.slane %v2101_v8, 1  ;;  %v1073_v18 = vrot.slane %v5833_v9, 1  ;;  %v2111_v19 = vrot.slane %v5837_v11, 1  ;;  %v2127_v21 = vrot.slane %v2105_v10, 1 }
 0x123   : > { %v1066_v22 = vsel %vm1054_vm3, %v1061_v53, %v1065_v12  ;;  %v1069_v23 = vor.u32 %v5829_v7, %v1065_v12  ;;  %v5853_v25 = vor.u32 %v1092_v14, %v1091_v13  ;;  %v2128_v26 = vrot.slane %v2101_v8, 2 }
 0x124   : > { %1837 = vmatprep.mubr.bf16.mxu1 %v1066_v22  ;;  %v2104_v27 = vsel %vm1054_vm3, %v2099_v56, %v2103_v17  ;;  %v2107_v29 = vor.u32 %v2105_v10, %v2103_v17  ;;  %v5860_v31 = vsel %vm1079_vm4, %v2117_v60, %v2118_v15  ;;  %v2131_v33 = vshrl.u32 %v5823_v5, 16 }
 0x125   : > { %1838 = vmatmul.mubr.bf16.vlgmr.msra.gmra.mrb[8].mxu1 %v5781_v30  ;;  %2646 = vmatprep.mubr.bf16.mxu0 %v2104_v27  ;;  %v1074_v36 = vsel %vm1054_vm3, %v1069_v23, %v1073_v18  ;;  %v1094_v38 = vsel %vm1087_vm5, %v1090_v57, %v5853_v25  ;;  %v2129_v40 = vor.u32 %v2128_v26, %v2127_v21  ;;  %v2134_v42 = vrot.slane %v5837_v11, 2 }
 0x126   : > { %1859 = vmatpush1.bf16.msra.mxu1 %v4914_v16  ;;  %1847 = vmatprep.mubr.bf16.mxu1 %v1074_v36  ;;  %v2112_v44 = vsel %vm1054_vm3, %v2107_v29, %v2111_v19  ;;  %v2133_v46 = vrot.slane %v2131_v33, 1  ;;  %v2120_v47 = vrot.slane %v5823_v5, 1  ;;  %v2148_v48 = vor.u32 %v2147_v62, %v2146_v61 }
 0x127   : > { %2647 = vmatmul.mubr.bf16.vlgmr.msra.gmra.mrb[16].mxu0 %v5785_v32  ;;  %1860 = vmatprep.subr.bf16.mxu1 %v4921_v24  ;;  %v2130_v50 = vsel %vm1087_vm5, %v2126_v1, %v2129_v40  ;;  %v2149_v51 = vrot.slane %v2105_v10, 2  ;;  %v2150_v52 = vrot.slane %v2101_v8, 3  ;;  %v1081_v53 = vrot.slane %v5811_v63, 1  ;;  %v4924_v8 = vld [vmem:[%s7073_s4 + $0x120] ss:$8 sps:$4 sm:$0xff]   ;;  %v4932_v24 = vld [vmem:[%s7076_s7 + $0xd8] sm:$0xff]  }
 0x128   : > { %4581 = vmatpush3.bf16.msra.mxu0 %v4918_v28  ;;  %2654 = vmatprep.mubr.bf16.mxu0 %v2112_v44  ;;  %v2135_v55 = vor.u32 %v2134_v42, %v2133_v46  ;;  %v5886_v56 = vsel %vm1079_vm4, %v2118_v15, %v2120_v47  ;;  %v1095_v57 = vshrl.u32 %v5815_v0, 16  ;;  %v1098_v58 = vrot.slane %v5833_v9, 2 }
 0x129   : > { %4582 = vmatprep.subr.bf16.mxu0 %v4922_v37  ;;  %v2151_v60 = vor.u32 %v2150_v52, %v2149_v51  ;;  %v5896_v61 = vsel %vm1079_vm4, %v1080_v3, %v1081_v53  ;;  %v2139_v62 = vrot.slane %v5785_v32, 2  ;;  %v2140_v1 = vrot.slane %v5819_v4, 2  ;;  %v4931_v3 = vld [vmem:[%s7073_s4 + $0x134] ss:$8 sps:$4 sm:$0xff]  }
 0x12a   : > { %1861 = vmatpush1.bf16.msra.mxu1 %v4919_v45  ;;  %v5904_v10 = vsel %vm1087_vm5, %v2129_v40, %v2135_v55  ;;  %v1097_v12 = vrot.slane %v1095_v57, 1  ;;  %v2153_v13 = vrot.slane %v2131_v33, 2  ;;  %v2154_v14 = vrot.slane %v5837_v11, 3  ;;  %v4928_v11 = vld [vmem:[%s7076_s7 + $0x90] sm:$0xff]   ;;  %v4933_v40 = vld [vmem:[%s7076_s7 + $0x98] sm:$0xff]   ;;  %v4938_v55 = vld [vmem:[%s7076_s7 + $0xa0] sm:$0xff]  }
 0x12b   : > { %1862 = vmatprep.subr.bf16.mxu1 %v4926_v49  ;;  %v5911_v15 = vsel %vm1111_vm6, %v2148_v48, %v2151_v60  ;;  %v5914_v16 = vsel %vm1103_vm7, %v2139_v62, %v2140_v1  ;;  %v1083_v17 = vrot.slane %v5815_v0, 1  ;;  %v1112_v18 = vrot.slane %v5788_v34, 2 }
 0x12c   : > { %4583 = vmatpush3.bf16.msra.mxu0 %v4923_v54  ;;  %v1099_v19 = vor.u32 %v1098_v58, %v1097_v12  ;;  %v2155_v21 = vor.u32 %v2154_v14, %v2153_v13  ;;  %v1113_v22 = vrot.slane %v5791_v35, 3  ;;  %v1115_v23 = vrot.slane %v5829_v7, 2  ;;  %v4929_v35 = vld [vmem:[%s7073_s4 + $0x130] ss:$8 sps:$4 sm:$0xff]   ;;  %v4941_v54 = vld [vmem:[%s7073_s4 + $0x154] ss:$8 sps:$4 sm:$0xff]  }
 0x12d   : > { %1848 = vmatmul.mubr.bf16.gmra.mrb[12].mxu1 %v5811_v63  ;;  %4584 = vmatprep.subr.bf16.mxu0 %v4927_v59  ;;  %v5928_v34 = vsel %vm1079_vm4, %v1081_v53, %v1083_v17  ;;  %v1116_v26 = vrot.slane %v5826_v6, 3  ;;  %v2142_v27 = vrot.slane %v5823_v5, 2  ;;  %v2159_v28 = vrot.slane %v5785_v32, 3  ;;  %v4936_v32 = vld [vmem:[%s7073_s4 + $0x144] ss:$8 sps:$4 sm:$0xff]   ;;  %v4947_v17 = vld [vmem:[%s7076_s7 + $0xf0] sm:$0xff]  }
 0x12e   : > { %1863 = vmatpush1.bf16.msra.mxu1 %v4924_v8  ;;  %1890 = vmatprep.mubr.bf16.mxu1 %v1094_v38  ;;  %v5938_v7 = vsel %vm1087_vm5, %v5853_v25, %v1099_v19  ;;  %v5941_v29 = vsel %vm1111_vm6, %v2151_v60, %v2155_v21  ;;  %v1114_v33 = vor.u32 %v1113_v22, %v1112_v18  ;;  %v2160_v6 = vrot.slane %v5819_v4, 3  ;;  %v4942_v58 = vld [vmem:[%s7076_s7 + $0xe8] sm:$0xff]   ;;  %v4939_v59 = vld [vmem:[%s7073_s4 + $0x150] ss:$8 sps:$4 sm:$0xff]   ;;  %v778_v60 = vpop.f32.mrb[0].mxu0 }
 0x12f   : > { %2655 = vmatmul.mubr.bf16.gmra.mrb[20].mxu0 %v5819_v4  ;;  %1864 = vmatprep.subr.bf16.mxu1 %v4931_v3  ;;  %v1117_v36 = vor.u32 %v1116_v26, %v1115_v23  ;;  %v5949_v37 = vsel %vm1103_vm7, %v2140_v1, %v2142_v27  ;;  %v2162_v25 = vrot.slane %v5823_v5, 3  ;;  %v1104_v38 = vrot.slane %v5781_v30, 2  ;;  %v4937_v5 = vld [vmem:[%s7076_s7 + $0xe0] sm:$0xff]   ;;  %v6011_v8 = vpop.f32.mrb[1].mxu0  ;;  %v4943_v12 = vld [vmem:[%s7076_s7 + $0xa8] sm:$0xff]   ;;  %v4948_v23 = vld [vmem:[%s7076_s7 + $0xb0] sm:$0xff]  }
 0x130   : > { %4585 = vmatpush3.bf16.msra.mxu0 %v4928_v11  ;;  %2695 = vmatprep.mubr.bf16.mxu0 %v2130_v50  ;;  %v5957_v4 = vsel %vm1125_vm8, %v2159_v28, %v2160_v6  ;;  %v1105_v42 = vrot.slane %v5811_v63, 2  ;;  %v1119_v44 = vrot.slane %v1095_v57, 2  ;;  %v1120_v45 = vrot.slane %v5833_v9, 3  ;;  %v4934_v9 = vld [vmem:[%s7073_s4 + $0x140] ss:$8 sps:$4 sm:$0xff]   ;;  %v782_v3 = vpop.f32.mrb[2].mxu0 }
 0x131   : > { %4586 = vmatprep.subr.bf16.mxu0 %v4932_v24  ;;  %v5965_v46 = vsel %vm1111_vm6, %v1114_v33, %v1117_v36  ;;  %v5968_v47 = vsel %vm1125_vm8, %v2160_v6, %v2162_v25  ;;  %v1107_v48 = vrot.slane %v5815_v0, 2  ;;  %v1126_v49 = vrot.slane %v5781_v30, 3  ;;  %v4946_v1 = vld [vmem:[%s7073_s4 + $0x164] ss:$8 sps:$4 sm:$0xff]   ;;  %v6027_v18 = vpop.f32.mrb[3].mxu0  ;;  %v4952_v27 = vld [vmem:[%s7076_s7 + $0xf8] sm:$0xff]  }
 0x132   : > { %1865 = vmatpush1.bf16.msra.mxu1 %v4929_v35  ;;  %v5976_v50 = vsel %vm1103_vm7, %v1104_v38, %v1105_v42  ;;  %v1121_v51 = vor.u32 %v1120_v45, %v1119_v44  ;;  %v1127_v52 = vrot.slane %v5811_v63, 3  ;;  %v1129_v53 = vrot.slane %v5815_v0, 3  ;;  %v4944_v11 = vld [vmem:[%s7073_s4 + $0x160] ss:$8 sps:$4 sm:$0xff]   ;;  %v4951_v22 = vld [vmem:[%s7073_s4 + $0x174] ss:$8 sps:$4 sm:$0xff]  }
 0x133   : > { %1866 = vmatprep.subr.bf16.mxu1 %v4936_v32  ;;  %v5984_v30 = vsel %vm1103_vm7, %v1105_v42, %v1107_v48  ;;  %v6006_v62 = vsub.s32 0, %v5755_v39  ;;  %v4949_v28 = vld [vmem:[%s7073_s4 + $0x170] ss:$8 sps:$4 sm:$0xff]   ;;  %v4956_v6 = vld [vmem:[%s7073_s4 + $0x184] ss:$8 sps:$4 sm:$0xff]   ;;  %v788_v44 = vpop.f32.mrb[4].mxu0 }
 0x134   : > { %4587 = vmatpush3.bf16.msra.mxu0 %v4933_v40  ;;  %v5990_v57 = vsel %vm1111_vm6, %v1117_v36, %v1121_v51  ;;  %v5993_v63 = vsel %vm1125_vm8, %v1126_v49, %v1127_v52  ;;  %v5996_v0 = vsel %vm1125_vm8, %v1127_v52, %v1129_v53  ;;  %v4953_v32 = vld [vmem:[%s7076_s7 + $0xb8] sm:$0xff]   ;;  %v4957_v36 = vld [vmem:[%s7076_s7 + $0x140] sm:$0xff]   ;;  %v4962_v42 = vld [vmem:[%s7076_s7 + $0x148] sm:$0xff]   ;;  %v923_v45 = vsub.s32 4, %v5755_v39  ;;  %v6075_v49 = vpop.f32.mrb[5].mxu0 }
 0x135   : > { %4588 = vmatprep.subr.bf16.mxu0 %v4937_v5  ;;  %v908_v13 = vrot.slane %v5761_v41, %v6006_v62  ;;  %v6020_v14 = vrot.slane %v5767_v43, %v6006_v62  ;;  %v4954_v25 = vld [vmem:[%s7073_s4 + $0x180] ss:$8 sps:$4 sm:$0xff]   ;;  %v4961_v38 = vld [vmem:[%s7073_s4 + $0x194] ss:$8 sps:$4 sm:$0xff]   ;;  %v4959_v5 = vld [vmem:[%s7073_s4 + $0x190] ss:$8 sps:$4 sm:$0xff]  }
 0x136   : > { %1867 = vmatpush1.bf16.msra.mxu1 %v4934_v9  ;;  %v4958_v40 = vld [vmem:[%s7076_s7 + $0x100] sm:$0xff]   ;;  %v927_v9 = vsub.s32 5, %v5755_v39  ;;  %v792_v52 = vpop.f32.mrb[6].mxu0  ;;  %v6083_v53 = vrot.slane %v5761_v41, %v923_v45 }
 0x137   : > { %1868 = vmatprep.subr.bf16.mxu1 %v4941_v54  ;;  %v935_v19 = vmul.f32 %v908_v13, %v778_v60  ;;  %v941_v21 = vmul.f32 %v908_v13, %v782_v3  ;;  %v947_v48 = vmul.f32 %v908_v13, %v788_v44  ;;  %v4966_v51 = vld [vmem:[%s7073_s4 + $0x1a4] ss:$8 sps:$4 sm:$0xff]   ;;  %v6086_v54 = vrot.slane %v5767_v43, %v923_v45 }
 0x138   : > { %4589 = vmatpush3.bf16.msra.mxu0 %v4938_v55  ;;  %v4963_v55 = vld [vmem:[%s7076_s7 + $0x108] sm:$0xff]   ;;  %v6096_v60 = vrot.slane %v5761_v41, %v927_v9 }
 0x139   : > { %4590 = vmatprep.subr.bf16.mxu0 %v4942_v58  ;;  %v991_v24 = vadd.f32 %v6020_v14, %v935_v19  ;;  %v997_v26 = vadd.f32 %v6020_v14, %v941_v21  ;;  %v953_v58 = vmul.f32 %v908_v13, %v792_v52  ;;  %v4964_v13 = vld [vmem:[%s7073_s4 + $0x1a0] ss:$8 sps:$4 sm:$0xff]   ;;  %v4971_v19 = vld [vmem:[%s7073_s4 + $0x1b4] ss:$8 sps:$4 sm:$0xff]  }
 0x13a   : > { %1869 = vmatpush1.bf16.msra.mxu1 %v4939_v59  ;;  %v6093_v59 = vpop.f32.mrb[7].mxu0  ;;  %v4968_v21 = vld [vmem:[%s7076_s7 + $0x110] sm:$0xff]   ;;  %v4974_v52 = vld [vmem:[%s7073_s4 + $0x1c0] ss:$8 sps:$4 sm:$0xff]  }
 0x13b   : > { %1870 = vmatprep.subr.bf16.mxu1 %v4946_v1  ;;  %v1015_v35 = vmax.f32 %v991_v24, 0.0  ;;  %v1017_v33 = vmax.f32 %v997_v26, 0.0  ;;  %v4967_v1 = vld [vmem:[%s7076_s7 + $0x150] sm:$0xff]  }
 0x13c   : > { %4591 = vmatpush3.bf16.msra.mxu0 %v4943_v12  ;;  %v6102_v12 = vrot.slane %v5767_v43, %v927_v9  ;;  %v4977_v9 = vld [vmem:[%s7076_s7 + $0x160] sm:$0xff]  }
 0x13d   : > { %4592 = vmatprep.subr.bf16.mxu0 %v4947_v17  ;;  %4110 = vst [vmem:[%s6052_s24] sm:$0xff] %v1015_v35  ;;  %4116 = vst [vmem:[%s6052_s24 + $0x30] sm:$0xff] %v1017_v33  ;;  %v1009_v17 = vadd.f32 %v6020_v14, %v953_v58 }
 0x13e   : > { %1871 = vmatpush1.bf16.msra.mxu1 %v4944_v11 }
 0x13f   : > { %1872 = vmatprep.subr.bf16.mxu1 %v4951_v22  ;;  %v1021_v22 = vmax.f32 %v1009_v17, 0.0 }
 0x140   : > { %4593 = vmatpush3.bf16.msra.mxu0 %v4948_v23  ;;  %v4972_v23 = vld [vmem:[%s7076_s7 + $0x158] sm:$0xff]  }
 0x141   : > { %4594 = vmatprep.subr.bf16.mxu0 %v4952_v27  ;;  %v4969_v27 = vld [vmem:[%s7073_s4 + $0x1b0] ss:$8 sps:$4 sm:$0xff]   ;;  %4128 = vst [vmem:[%s6052_s24 + $0x90] sm:$0xff] %v1021_v22 }
 0x142   : > { %1873 = vmatpush1.bf16.msra.mxu1 %v4949_v28 }
 0x143   : > { %1874 = vmatprep.subr.bf16.mxu1 %v4956_v6  ;;  %v5313_v6 = vmov 0.0  }
 0x144   : > { %4595 = vmatpush3.bf16.msra.mxu0 %v4953_v32  ;;  %v3985_v32 = vsel %vm3981_vm10, 1.0, %v5313_v6 }
 0x145   : > { %4608 = vmatprep.subr.bf16.mxu0 %v4957_v36  ;;  %v4976_v36 = vld [vmem:[%s7073_s4 + $0x1c4] ss:$8 sps:$4 sm:$0xff]  }
 0x146   : > { %1875 = vmatpush1.bf16.msra.mxu1 %v4954_v25 }
 0x147   : > { %2696 = vmatmul.mubr.bf16.vlgmr.msra.gmra.mrb[24].mxu0 %v5860_v31  ;;  %1876 = vmatprep.subr.bf16.mxu1 %v4961_v38  ;;  %v1003_v31 = vadd.f32 %v6020_v14, %v947_v48  ;;  %v3989_v48 = vadd.f32 1.0, %v3985_v32 }
 0x148   : > { %2703 = vmatprep.mubr.bf16.mxu0 %v5904_v10  ;;  %4609 = vmatpush3.bf16.msra.mxu0 %v4958_v40  ;;  %v884_v10 = vpop.f32.mrb[8].mxu0 }
 0x149   : > { %4610 = vmatprep.subr.bf16.mxu0 %v4962_v42  ;;  %v1019_v3 = vmax.f32 %v1003_v31, 0.0  ;;  %v939_v41 = vmul.f32 %v6083_v53, %v884_v10  ;;  %v886_v11 = vpop.f32.mrb[9].mxu0  ;;  %v4973_v42 = vld [vmem:[%s7076_s7 + $0x118] sm:$0xff]  }
 0x14a   : > { %1877 = vmatpush1.bf16.msra.mxu1 %v4959_v5  ;;  %v940_v43 = vmul.f32 %v6096_v60, %v886_v11  ;;  %v888_v26 = vpop.f32.mrb[10].mxu0 }
 0x14b   : > { %1878 = vmatprep.subr.bf16.mxu1 %v4966_v51  ;;  %4122 = vst [vmem:[%s6052_s24 + $0x60] sm:$0xff] %v1019_v3  ;;  %v995_v14 = vadd.f32 %v6086_v54, %v939_v41  ;;  %v945_v35 = vmul.f32 %v6083_v53, %v888_v26  ;;  %v890_v33 = vpop.f32.mrb[11].mxu0 }
 0x14c   : > { %4611 = vmatpush3.bf16.msra.mxu0 %v4963_v55  ;;  %v996_v24 = vadd.f32 %v6102_v12, %v940_v43  ;;  %v946_v38 = vmul.f32 %v6096_v60, %v890_v33  ;;  %v894_v40 = vpop.f32.mrb[12].mxu0 }
 0x14d   : > { %4612 = vmatprep.subr.bf16.mxu0 %v4967_v1  ;;  %v3874_v28 = vrot.slane %v995_v14, 7  ;;  %v951_v45 = vmul.f32 %v6083_v53, %v894_v40  ;;  %v896_v5 = vpop.f32.mrb[13].mxu0  ;;  %v4001_v14 = vadd.f32 1.0, %v3989_v48 }
 0x14e   : > { %1879 = vmatpush1.bf16.msra.mxu1 %v4964_v13  ;;  %v3875_v25 = vrot.slane %v996_v24, 7  ;;  %v1002_v51 = vadd.f32 %v6102_v12, %v946_v38  ;;  %v4981_v13 = vld [vmem:[%s7073_s4 + $0x1d4] ss:$8 sps:$4 sm:$0xff]   ;;  %v952_v17 = vmul.f32 %v6096_v60, %v896_v5 }
 0x14f   : > { %2704 = vmatmul.mubr.bf16.gmra.mrb[28].mxu0 %v5886_v56  ;;  %1880 = vmatprep.subr.bf16.mxu1 %v4971_v19  ;;  %v3898_v44 = vsel %vm3873_vm9, 0.0, %v3874_v28  ;;  %v1001_v56 = vadd.f32 %v6086_v54, %v945_v35  ;;  %v1007_v1 = vadd.f32 %v6086_v54, %v951_v45  ;;  %v4978_v19 = vld [vmem:[%s7076_s7 + $0x120] sm:$0xff]   ;;  %5242 = vrcp.f32 %v4001_v14  ;;  %v4987_v5 = vld [vmem:[%s7076_s7 + $0x170] sm:$0xff]  }
 0x150   : > { %4613 = vmatpush3.bf16.msra.mxu0 %v4968_v21  ;;  %2744 = vmatprep.mubr.bf16.mxu0 %v5911_v15  ;;  %v898_v15 = vpop.f32.mrb[14].mxu0  ;;  %v3907_v55 = vrot.slane %v3898_v44, 1  ;;  %v6149_v31 = vsel %vm3873_vm9, 0.0, %v3875_v25  ;;  %v3878_v3 = vrot.slane %v1002_v51, 7  ;;  %v3942_v43 = vrot.slane %v3898_v44, 2 }
 0x151   : > { %4614 = vmatprep.subr.bf16.mxu0 %v4972_v23  ;;  %v3876_v58 = vrot.slane %v1001_v56, 7  ;;  %v900_v10 = vpop.f32.mrb[15].mxu0  ;;  %v957_v41 = vmul.f32 %v6083_v53, %v898_v15  ;;  %v3880_v22 = vrot.slane %v1007_v1, 7  ;;  %v4982_v23 = vld [vmem:[%s7076_s7 + $0x168] sm:$0xff]  }
 0x152   : > { %1881 = vmatpush1.bf16.msra.mxu1 %v4969_v27  ;;  %v958_v11 = vmul.f32 %v6096_v60, %v900_v10  ;;  %v3879_v53 = vsel %vm3873_vm9, %v3875_v25, %v3878_v3  ;;  %v1008_v60 = vadd.f32 %v6102_v12, %v952_v17  ;;  %v4979_v27 = vld [vmem:[%s7073_s4 + $0x1d0] ss:$8 sps:$4 sm:$0xff]   ;;  %v4991_v10 = vld [vmem:[%s7073_s4 + $0x1f4] ss:$8 sps:$4 sm:$0xff]  }
 0x153   : > { %1882 = vmatprep.subr.bf16.mxu1 %v4976_v36  ;;  %v3877_v21 = vsel %vm3873_vm9, %v3874_v28, %v3876_v58  ;;  %v1013_v26 = vadd.f32 %v6086_v54, %v957_v41  ;;  %v3910_v28 = vrot.slane %v6149_v31, 1  ;;  %v3881_v35 = vsel %vm3873_vm9, %v3876_v58, %v3880_v22  ;;  %v4986_v36 = vld [vmem:[%s7073_s4 + $0x1e4] ss:$8 sps:$4 sm:$0xff]   ;;  %v4988_v41 = vld [vmem:[%s7076_s7 + $0x130] sm:$0xff]  }
 0x154   : > { %4615 = vmatpush3.bf16.msra.mxu0 %v4973_v42  ;;  %v3908_v24 = vrot.slane %v3877_v21, 1  ;;  %v1014_v33 = vadd.f32 %v6102_v12, %v958_v11  ;;  %v3943_v32 = vrot.slane %v3877_v21, 2  ;;  %v3911_v25 = vrot.slane %v3879_v53, 1  ;;  %v4983_v42 = vld [vmem:[%s7076_s7 + $0x128] sm:$0xff]  }
 0x155   : > { %4616 = vmatprep.subr.bf16.mxu0 %v4977_v9  ;;  %v3913_v38 = vrot.slane %v3881_v35, 1  ;;  %v3882_v54 = vrot.slane %v1008_v60, 7  ;;  %v3884_v40 = vrot.slane %v1013_v26, 7  ;;  %v3948_v58 = vrot.slane %v3881_v35, 2 }
 0x156   : > { %1883 = vmatpush1.bf16.msra.mxu1 %v4974_v52  ;;  %v3886_v56 = vrot.slane %v1014_v33, 7  ;;  %v3909_v45 = vsel %vm1079_vm4, %v3907_v55, %v3908_v24  ;;  %v3944_v12 = vsel %vm1103_vm7, %v3942_v43, %v3943_v32  ;;  %v4984_v52 = vld [vmem:[%s7073_s4 + $0x1e0] ss:$8 sps:$4 sm:$0xff]   ;;  %v3945_v55 = vrot.slane %v6149_v31, 2 }
 0x157   : > { %1884 = vmatprep.subr.bf16.mxu1 %v4981_v13  ;;  %v3883_v48 = vsel %vm3873_vm9, %v3878_v3, %v3882_v54  ;;  %v6187_v9 = vsel %vm3873_vm9, %v3880_v22, %v3884_v40  ;;  %v6190_v51 = vsel %vm3873_vm9, %v3884_v40, 0.0  ;;  %v3933_v15 = vadd.f32 %v3909_v45, %v3898_v44  ;;  %v4992_v22 = vld [vmem:[%s7076_s7 + $0x178] sm:$0xff]  }
 0x158   : > { %4617 = vmatpush3.bf16.msra.mxu0 %v4978_v19  ;;  %v3915_v1 = vrot.slane %v3883_v48, 1  ;;  %v3950_v13 = vrot.slane %v3883_v48, 2  ;;  %v3917_v3 = vrot.slane %v6187_v9, 1  ;;  %v6201_v17 = vsel %vm3873_vm9, %v3882_v54, %v3886_v56 }
 0x159   : > { %4618 = vmatprep.subr.bf16.mxu0 %v4982_v23  ;;  %v6204_v44 = vsel %vm3873_vm9, %v3886_v56, 0.0  ;;  %v3952_v11 = vrot.slane %v6187_v9, 2  ;;  %v3919_v19 = vrot.slane %v6201_v17, 1  ;;  %v3954_v43 = vrot.slane %v6201_v17, 2 }
 0x15a   : > { %1885 = vmatpush1.bf16.msra.mxu1 %v4979_v27  ;;  %v3968_v14 = vadd.f32 %v3944_v12, %v3933_v15  ;;  %v3912_v23 = vsel %vm1079_vm4, %v3910_v28, %v3911_v25  ;;  %v3946_v60 = vrot.slane %v3879_v53, 2  ;;  %v3914_v26 = vsel %vm1079_vm4, %v3908_v24, %v3913_v38  ;;  %v4989_v27 = vld [vmem:[%s7073_s4 + $0x1f0] ss:$8 sps:$4 sm:$0xff]   ;;  %v4996_v28 = vld [vmem:[%s7073_s4 + $0x204] ss:$8 sps:$4 sm:$0xff]  }
 0x15b   : > { %1886 = vmatprep.subr.bf16.mxu1 %v4986_v36  ;;  %v3934_v33 = vadd.f32 %v3912_v23, %v6149_v31  ;;  %v3935_v36 = vadd.f32 %v3914_v26, %v3877_v21  ;;  %v3949_v54 = vsel %vm1103_vm7, %v3943_v32, %v3948_v58  ;;  %v3916_v40 = vsel %vm1079_vm4, %v3911_v25, %v3915_v1  ;;  %v4993_v31 = vld [vmem:[%s7076_s7 + $0x138] sm:$0xff]  }
 0x15c   : > { %4619 = vmatpush3.bf16.msra.mxu0 %v4983_v42  ;;  %v3947_v42 = vsel %vm1103_vm7, %v3945_v55, %v3946_v60  ;;  %v3936_v24 = vadd.f32 %v3916_v40, %v3879_v53  ;;  %v3951_v56 = vsel %vm1103_vm7, %v3946_v60, %v3950_v13  ;;  %v3918_v45 = vsel %vm1079_vm4, %v3913_v38, %v3917_v3  ;;  %v4997_v53 = vld [vmem:[%s7076_s7 + $0x180] sm:$0xff]  }
 0x15d   : > { %4620 = vmatprep.subr.bf16.mxu0 %v4987_v5  ;;  %v3969_v21 = vadd.f32 %v3947_v42, %v3934_v33  ;;  %v3970_v32 = vadd.f32 %v3949_v54, %v3935_v36  ;;  %v3937_v25 = vadd.f32 %v3918_v45, %v3881_v35  ;;  %v3953_v12 = vsel %vm1103_vm7, %v3948_v58, %v3952_v11  ;;  %v4994_v35 = vld [vmem:[%s7073_s4 + $0x200] ss:$8 sps:$4 sm:$0xff]   ;;  %v5006_v54 = vld [vmem:[%s7073_s4 + $0x230] ss:$8 sps:$4 sm:$0xff]  }
 0x15e   : > { %1887 = vmatpush1.bf16.msra.mxu1 %v4984_v52  ;;  %v3971_v5 = vadd.f32 %v3951_v56, %v3936_v24  ;;  %v3920_v38 = vsel %vm1079_vm4, %v3915_v1, %v3919_v19  ;;  %v3955_v15 = vsel %vm1103_vm7, %v3950_v13, %v3954_v43  ;;  %v5243_v52 = vpop.eup %5242  ;;  %v5001_v13 = vld [vmem:[%s7076_s7 + $0x188] sm:$0xff]   ;;  %v5014_v45 = vld [vmem:[%s7073_s4 + $0x250] ss:$8 sps:$4 sm:$0xff]  }
 0x15f   : > { %1888 = vmatprep.subr.bf16.mxu1 %v4991_v10  ;;  %v3972_v55 = vadd.f32 %v3953_v12, %v3937_v25  ;;  %v3938_v58 = vadd.f32 %v3920_v38, %v3883_v48  ;;  %v5000_v10 = vld [vmem:[%s7073_s4 + $0x214] ss:$8 sps:$4 sm:$0xff]   ;;  %v4998_v48 = vld [vmem:[%s7073_s4 + $0x210] ss:$8 sps:$4 sm:$0xff]   ;;  %v5017_v56 = vld [vmem:[%s7076_s7 + $0x1a8] sm:$0xff]  }
 0x160   : > { %4621 = vmatpush3.bf16.msra.mxu0 %v4988_v41  ;;  %v4013_v41 = vmul.f32 %v5243_v52, %v3968_v14  ;;  %v4015_v14 = vmul.f32 0.33333334, %v3970_v32  ;;  %v4016_v26 = vmul.f32 0.33333334, %v3971_v5  ;;  %v5018_v32 = vld [vmem:[%s7073_s4 + $0x260] ss:$8 sps:$4 sm:$0xff]  }
 0x161   : > { %4622 = vmatprep.subr.bf16.mxu0 %v4992_v22  ;;  %v4014_v22 = vmul.f32 %v5243_v52, %v3969_v21  ;;  %v3973_v1 = vadd.f32 %v3955_v15, %v3938_v58  ;;  %v4017_v36 = vmul.f32 0.33333334, %v3972_v55  ;;  %v5021_v21 = vld [vmem:[%s7076_s7 + $0x1b0] sm:$0xff]   ;;  %v5025_v12 = vld [vmem:[%s7076_s7 + $0x1b8] sm:$0xff]   ;;  %v5028_v5 = vld [vmem:[%s7073_s4 + $0x284] ss:$8 sps:$4 sm:$0xff]  }
 0x162   : > { %1889 = vmatpush1.bf16.msra.mxu1 %v4989_v27  ;;  %v4021_v23 = vmax.f32 %v4013_v41, 0.0  ;;  %v5009_v27 = vld [vmem:[%s7076_s7 + $0x198] sm:$0xff]   ;;  %v4023_v33 = vmax.f32 %v4015_v14, 0.0  ;;  %v4024_v40 = vmax.f32 %v4016_v26, 0.0  ;;  %v5026_v38 = vld [vmem:[%s7073_s4 + $0x280] ss:$8 sps:$4 sm:$0xff]  }
 0x163   : > { %1911 = vmatprep.subr.bf16.mxu1 %v4996_v28  ;;  %v4022_v60 = vmax.f32 %v4014_v22, 0.0  ;;  %v4018_v28 = vmul.f32 0.33333334, %v3973_v1  ;;  %v4025_v42 = vmax.f32 %v4017_v36, 0.0  ;;  %v5024_v25 = vld [vmem:[%s7073_s4 + $0x274] ss:$8 sps:$4 sm:$0xff]  }
 0x164   : > { %4623 = vmatpush3.bf16.msra.mxu0 %v4993_v31  ;;  %4074 = vrot.lane.b32.xlu0 %v4021_v23, %s5314_s22  ;;  %v5020_v31 = vld [vmem:[%s7073_s4 + $0x264] ss:$8 sps:$4 sm:$0xff]   ;;  %v5031_v15 = vld [vmem:[%s7073_s4 + $0x294] ss:$8 sps:$4 sm:$0xff]   ;;  %v5029_v52 = vld [vmem:[%s7073_s4 + $0x290] ss:$8 sps:$4 sm:$0xff]  }
 0x165   : > { %1891 = vmatmul.mubr.bf16.vlgmr.msra.gmra.mrb[8].mxu1 %v5896_v61  ;;  %4646 = vmatprep.subr.bf16.mxu0 %v4997_v53  ;;  %v5004_v61 = vld [vmem:[%s7073_s4 + $0x224] ss:$8 sps:$4 sm:$0xff]   ;;  %v4026_v24 = vmax.f32 %v4018_v28, 0.0  ;;  %v5037_v22 = vld [vmem:[%s7073_s4 + $0x2b4] ss:$8 sps:$4 sm:$0xff]   ;;  %v3921_v1 = vrot.slane %v6190_v51, 1 }
 0x166   : > { %1900 = vmatprep.mubr.bf16.mxu1 %v5938_v7  ;;  %1912 = vmatpush1.bf16.msra.mxu1 %v4994_v35  ;;  %v5005_v7 = vld [vmem:[%s7076_s7 + $0x190] sm:$0xff]   ;;  %v3980_v35 = vadd.s32 24, %v5755_v39  ;;  %v5034_v55 = vld [vmem:[%s7073_s4 + $0x2a4] ss:$8 sps:$4 sm:$0xff]   ;;  %v3956_v23 = vrot.slane %v6190_v51, 2 }
 0x167   : > { %2745 = vmatmul.mubr.bf16.vlgmr.msra.gmra.mrb[32].mxu0 %v5914_v16  ;;  %1913 = vmatprep.subr.bf16.mxu1 %v5000_v10  ;;  %v5002_v16 = vld [vmem:[%s7073_s4 + $0x220] ss:$8 sps:$4 sm:$0xff]   ;;  %v5043_v51 = vld [vmem:[%s7073_s4 + $0x2d4] ss:$8 sps:$4 sm:$0xff]   ;;  %v5047_v36 = vld [vmem:[%s7073_s4 + $0x2f0] ss:$8 sps:$4 sm:$0xff]  }
 0x168   : > { %2752 = vmatprep.mubr.bf16.mxu0 %v5941_v29  ;;  %4647 = vmatpush3.bf16.msra.mxu0 %v4997_v53  ;;  %v5008_v29 = vld [vmem:[%s7073_s4 + $0x234] ss:$8 sps:$4 sm:$0xff]   ;;  %v5022_v53 = vld [vmem:[%s7073_s4 + $0x270] ss:$8 sps:$4 sm:$0xff]   ;;  %vm3996_vm11 = vcmp.lt.s32.totalorder %v3980_v35, 31 }
 0x169   : > { %4648 = vmatprep.subr.bf16.mxu0 %v5001_v13  ;;  %4076 = vrot.lane.b32.xlu1 %v4022_v60, %s5314_s22  ;;  %v4000_v58 = vsel %vm3996_vm11, 1.0, %v5313_v6  ;;  %v5032_v10 = vld [vmem:[%s7073_s4 + $0x2a0] ss:$8 sps:$4 sm:$0xff]   ;;  %v3923_v6 = vrot.slane %v6204_v44, 1  ;;  %v5055_v28 = vld [vmem:[%s7073_s4 + $0x314] ss:$8 sps:$4 sm:$0xff]  }
 0x16a   : > { %1914 = vmatpush1.bf16.msra.mxu1 %v4998_v48  ;;  %4078 = vrot.lane.b32.xlu0 %v4023_v33, %s5314_s22  ;;  %v4004_v41 = vadd.f32 2.0, %v4000_v58  ;;  %v3958_v48 = vrot.slane %v6204_v44, 2  ;;  %v5038_v60 = vld [vmem:[%s7073_s4 + $0x2c0] ss:$8 sps:$4 sm:$0xff]   ;;  %v5046_v33 = vld [vmem:[%s7073_s4 + $0x2e4] ss:$8 sps:$4 sm:$0xff]  }
 0x16b   : > { %1915 = vmatprep.subr.bf16.mxu1 %v5004_v61  ;;  %v3922_v61 = vsel %vm1079_vm4, %v3917_v3, %v3921_v1  ;;  %v5082_v35 = vld [vmem:[%s7079_s10 + $0x14] ss:$8 sps:$4 sm:$0xff]   ;;  %v5086_v1 = vld [vmem:[%s7079_s10 + $0x20] ss:$8 sps:$4 sm:$0xff]  }
 0x16c   : > { %4649 = vmatpush3.bf16.msra.mxu0 %v5001_v13  ;;  %5244 = vrcp.f32 %v4004_v41  ;;  %v5040_v13 = vld [vmem:[%s7073_s4 + $0x2c4] ss:$8 sps:$4 sm:$0xff]   ;;  %v3939_v44 = vadd.f32 %v3922_v61, %v6187_v9  ;;  %v3959_v3 = vsel %vm1103_vm7, %v3954_v43, %v3958_v48  ;;  %v5049_v43 = vld [vmem:[%s7073_s4 + $0x2f4] ss:$8 sps:$4 sm:$0xff]   ;;  %v5092_v48 = vld [vmem:[%s7079_s10 + $0x30] ss:$8 sps:$4 sm:$0xff]  }
 0x16d   : > { %1901 = vmatmul.mubr.bf16.gmra.mrb[12].mxu1 %v5928_v34  ;;  %4650 = vmatprep.subr.bf16.mxu0 %v5005_v7  ;;  %v5012_v34 = vld [vmem:[%s7073_s4 + $0x244] ss:$8 sps:$4 sm:$0xff]   ;;  %v5097_v58 = vld [vmem:[%s7079_s10 + $0x134] ss:$8 sps:$4 sm:$0xff]   ;;  %v5113_v61 = vld [vmem:[%s7079_s10 + $0x160] ss:$8 sps:$4 sm:$0xff]  }
 0x16e   : > { %1916 = vmatpush1.bf16.msra.mxu1 %v5002_v16  ;;  %1943 = vmatprep.mubr.bf16.mxu1 %v5965_v46  ;;  %v5013_v46 = vld [vmem:[%s7076_s7 + $0x1a0] sm:$0xff]   ;;  %v3957_v16 = vsel %vm1103_vm7, %v3952_v11, %v3956_v23 }
 0x16f   : > { %2753 = vmatmul.mubr.bf16.gmra.mrb[36].mxu0 %v5949_v37  ;;  %1917 = vmatprep.subr.bf16.mxu1 %v5008_v29  ;;  %v5010_v37 = vld [vmem:[%s7073_s4 + $0x240] ss:$8 sps:$4 sm:$0xff]   ;;  %v3974_v26 = vadd.f32 %v3957_v16, %v3939_v44  ;;  %v5088_v41 = vld [vmem:[%s7079_s10 + $0x24] ss:$8 sps:$4 sm:$0xff]   ;;  %v5119_v44 = vld [vmem:[%s7079_s10 + $0x170] ss:$8 sps:$4 sm:$0xff]  }
 0x170   : > { %4651 = vmatpush3.bf16.msra.mxu0 %v5005_v7  ;;  %4662 = vmatprep.mubr.bf16.mxu0 %v5957_v4  ;;  %v5016_v4 = vld [vmem:[%s7073_s4 + $0x254] ss:$8 sps:$4 sm:$0xff]   ;;  %v3924_v7 = vsel %vm1079_vm4, %v3919_v19, %v3923_v6  ;;  %v5115_v23 = vld [vmem:[%s7079_s10 + $0x164] ss:$8 sps:$4 sm:$0xff]   ;;  %v5104_v16 = vld [vmem:[%s7079_s10 + $0x50] ss:$8 sps:$4 sm:$0xff]  }
 0x171   : > { %4652 = vmatprep.subr.bf16.mxu0 %v5009_v27  ;;  %4080 = vrot.lane.b32.xlu1 %v4024_v40, %s5314_s22  ;;  %v3940_v14 = vadd.f32 %v3924_v7, %v6201_v17  ;;  %v5044_v17 = vld [vmem:[%s7073_s4 + $0x2e0] ss:$8 sps:$4 sm:$0xff]   ;;  %v5094_v6 = vld [vmem:[%s7079_s10 + $0x34] ss:$8 sps:$4 sm:$0xff]  }
 0x172   : > { %1918 = vmatpush1.bf16.msra.mxu1 %v5006_v54  ;;  %4082 = vrot.lane.b32.xlu0 %v4025_v42, %s5314_s22  ;;  %v5052_v54 = vld [vmem:[%s7073_s4 + $0x304] ss:$8 sps:$4 sm:$0xff]   ;;  %v5050_v40 = vld [vmem:[%s7073_s4 + $0x300] ss:$8 sps:$4 sm:$0xff]  }
 0x173   : > { %1919 = vmatprep.subr.bf16.mxu1 %v5012_v34  ;;  %v3975_v29 = vadd.f32 %v3959_v3, %v3940_v14  ;;  %v5053_v34 = vld [vmem:[%s7073_s4 + $0x310] ss:$8 sps:$4 sm:$0xff]   ;;  %v5077_v42 = vld [vmem:[%s7079_s10 + $0x100] ss:$8 sps:$4 sm:$0xff]   ;;  %v5127_v14 = vld [vmem:[%s7079_s10 + $0x184] ss:$8 sps:$4 sm:$0xff]  }
 0x174   : > { %4653 = vmatpush3.bf16.msra.mxu0 %v5009_v27  ;;  %v5041_v27 = vld [vmem:[%s7073_s4 + $0x2d0] ss:$8 sps:$4 sm:$0xff]   ;;  %v5098_v7 = vld [vmem:[%s7079_s10 + $0x40] ss:$8 sps:$4 sm:$0xff]   ;;  %v5112_v3 = vld [vmem:[%s7079_s10 + $0x64] ss:$8 sps:$4 sm:$0xff]  }
 0x175   : > { %4654 = vmatprep.subr.bf16.mxu0 %v5013_v46  ;;  %4084 = vrot.lane.b32.xlu1 %v4026_v24, %s5314_s22  ;;  %v5059_v24 = vld [vmem:[%s7073_s4 + $0x330] ss:$8 sps:$4 sm:$0xff]  }
 0x176   : > { %1920 = vmatpush1.bf16.msra.mxu1 %v5010_v37  ;;  %v5245_v19 = vpop.eup %5244  ;;  %v5061_v37 = vld [vmem:[%s7073_s4 + $0x334] ss:$8 sps:$4 sm:$0xff]  }
 0x177   : > { %1921 = vmatprep.subr.bf16.mxu1 %v5016_v4  ;;  %v6386_v9 = vmul.f32 %v5245_v19, %v3974_v26  ;;  %v6388_v11 = vmul.f32 %v5245_v19, %v3975_v29  ;;  %v5064_v4 = vld [vmem:[%s7073_s4 + $0x344] ss:$8 sps:$4 sm:$0xff]   ;;  %v5125_v26 = vld [vmem:[%s7079_s10 + $0x180] ss:$8 sps:$4 sm:$0xff]   ;;  %v5118_v19 = vld [vmem:[%s7079_s10 + $0x74] ss:$8 sps:$4 sm:$0xff]  }
 0x178   : > { %4655 = vmatpush3.bf16.msra.mxu0 %v5013_v46  ;;  %v5058_v46 = vld [vmem:[%s7073_s4 + $0x324] ss:$8 sps:$4 sm:$0xff]   ;;  %v5110_v29 = vld [vmem:[%s7079_s10 + $0x60] ss:$8 sps:$4 sm:$0xff]  }
 0x179   : > { %4656 = vmatprep.subr.bf16.mxu0 %v5017_v56 }
 0x17a   : > { %1922 = vmatpush1.bf16.msra.mxu1 %v5014_v45  ;;  %v5065_v45 = vld [vmem:[%s7073_s4 + $0x350] ss:$8 sps:$4 sm:$0xff]  }
 0x17b   : > { %1923 = vmatprep.subr.bf16.mxu1 %v5020_v31  ;;  %v5070_v31 = vld [vmem:[%s7073_s4 + $0x364] ss:$8 sps:$4 sm:$0xff]  }
 0x17c   : > { %4657 = vmatpush3.bf16.msra.mxu0 %v5017_v56  ;;  %v5062_v56 = vld [vmem:[%s7073_s4 + $0x340] ss:$8 sps:$4 sm:$0xff]  }
 0x17d   : > { %4658 = vmatprep.subr.bf16.mxu0 %v5021_v21 }
 0x17e   : > { %1924 = vmatpush1.bf16.msra.mxu1 %v5018_v32  ;;  %v5083_v32 = vld [vmem:[%s7079_s10 + $0x110] ss:$8 sps:$4 sm:$0xff]  }
 0x17f   : > { %1925 = vmatprep.subr.bf16.mxu1 %v5024_v25  ;;  %v5073_v25 = vld [vmem:[%s7073_s4 + $0x374] ss:$8 sps:$4 sm:$0xff]  }
 0x180   : > { %4659 = vmatpush3.bf16.msra.mxu0 %v5021_v21  ;;  %v5068_v21 = vld [vmem:[%s7073_s4 + $0x360] ss:$8 sps:$4 sm:$0xff]  }
 0x181   : > { %4660 = vmatprep.subr.bf16.mxu0 %v5025_v12 }
 0x182   : > { %1926 = vmatpush1.bf16.msra.mxu1 %v5022_v53  ;;  %v5071_v53 = vld [vmem:[%s7073_s4 + $0x370] ss:$8 sps:$4 sm:$0xff]  }
 0x183   : > { %1927 = vmatprep.subr.bf16.mxu1 %v5028_v5  ;;  %v5089_v5 = vld [vmem:[%s7079_s10 + $0x120] ss:$8 sps:$4 sm:$0xff]  }
 0x184   : > { %4661 = vmatpush3.bf16.msra.mxu0 %v5025_v12  ;;  %v5085_v12 = vld [vmem:[%s7079_s10 + $0x114] ss:$8 sps:$4 sm:$0xff]  }
 0x186   : > { %1928 = vmatpush1.bf16.msra.mxu1 %v5026_v38  ;;  %v5076_v38 = vld [vmem:[%s7079_s10 + $0x4] ss:$8 sps:$4 sm:$0xff]  }
 0x187   : > { %4663 = vmatmul.mubr.bf16.vlgmr.msra.gmra.mrb[40].mxu0 %v5968_v47  ;;  %1929 = vmatprep.subr.bf16.mxu1 %v5031_v15  ;;  %v5035_v47 = vld [vmem:[%s7073_s4 + $0x2b0] ss:$8 sps:$4 sm:$0xff]   ;;  %v5091_v15 = vld [vmem:[%s7079_s10 + $0x124] ss:$8 sps:$4 sm:$0xff]  }
 0x18a   : > { %1930 = vmatpush1.bf16.msra.mxu1 %v5029_v52  ;;  %v5074_v52 = vld [vmem:[%s7079_s10] ss:$8 sps:$4 sm:$0xff]  }
 0x18b   : > { %1931 = vmatprep.subr.bf16.mxu1 %v5034_v55  ;;  %v5095_v55 = vld [vmem:[%s7079_s10 + $0x130] ss:$8 sps:$4 sm:$0xff]  }
 0x18e   : > { %1932 = vmatpush1.bf16.msra.mxu1 %v5032_v10  ;;  %v5080_v10 = vld [vmem:[%s7079_s10 + $0x10] ss:$8 sps:$4 sm:$0xff]  }
 0x18f   : > { %1933 = vmatprep.subr.bf16.mxu1 %v5037_v22  ;;  %v5101_v22 = vld [vmem:[%s7079_s10 + $0x140] ss:$8 sps:$4 sm:$0xff]  }
 0x192   : > { %1934 = vmatpush1.bf16.msra.mxu1 %v5035_v47  ;;  %v5109_v47 = vld [vmem:[%s7079_s10 + $0x154] ss:$8 sps:$4 sm:$0xff]  }
 0x193   : > { %1935 = vmatprep.subr.bf16.mxu1 %v5040_v13  ;;  %v5107_v13 = vld [vmem:[%s7079_s10 + $0x150] ss:$8 sps:$4 sm:$0xff]  }
 0x196   : > { %1936 = vmatpush1.bf16.msra.mxu1 %v5038_v60  ;;  %v5100_v60 = vld [vmem:[%s7079_s10 + $0x44] ss:$8 sps:$4 sm:$0xff]  }
 0x197   : > { %1937 = vmatprep.subr.bf16.mxu1 %v5043_v51  ;;  %v5106_v51 = vld [vmem:[%s7079_s10 + $0x54] ss:$8 sps:$4 sm:$0xff]  }
 0x19a   : > { %1938 = vmatpush1.bf16.msra.mxu1 %v5041_v27 }
 0x19b   : > { %1939 = vmatprep.subr.bf16.mxu1 %v5046_v33 }
 0x19e   : > { %1940 = vmatpush1.bf16.msra.mxu1 %v5044_v17 }
 0x19f   : > { %1941 = vmatprep.subr.bf16.mxu1 %v5049_v43  ;;  %v5116_v43 = vld [vmem:[%s7079_s10 + $0x70] ss:$8 sps:$4 sm:$0xff]  }
 0x1a2   : > { %1942 = vmatpush1.bf16.msra.mxu1 %v5047_v36  ;;  %v5124_v36 = vld [vmem:[%s7079_s10 + $0x84] ss:$8 sps:$4 sm:$0xff]  }
 0x1a3   : > { %1964 = vmatprep.subr.bf16.mxu1 %v5052_v54  ;;  %v5131_v54 = vld [vmem:[%s7079_s10 + $0x190] ss:$8 sps:$4 sm:$0xff]  }
 0x1a5   : > { %1944 = vmatmul.mubr.bf16.vlgmr.msra.gmra.mrb[8].mxu1 %v5976_v50  ;;  %v5079_v50 = vld [vmem:[%s7079_s10 + $0x104] ss:$8 sps:$4 sm:$0xff]  }
 0x1a6   : > { %1953 = vmatprep.mubr.bf16.mxu1 %v5990_v57  ;;  %1965 = vmatpush1.bf16.msra.mxu1 %v5050_v40  ;;  %v5056_v57 = vld [vmem:[%s7073_s4 + $0x320] ss:$8 sps:$4 sm:$0xff]  }
 0x1a7   : > { %1966 = vmatprep.subr.bf16.mxu1 %v5055_v28  ;;  %3658 = vmatprep.subr.bf16.mxu0 %v5079_v50  ;;  %v5122_v40 = vld [vmem:[%s7079_s10 + $0x80] ss:$8 sps:$4 sm:$0xff]   ;;  %v5133_v28 = vld [vmem:[%s7079_s10 + $0x194] ss:$8 sps:$4 sm:$0xff]  }
 0x1a8   : > { %3659 = vmatpush1.bf16.msra.mxu0 %v5077_v42 }
 0x1a9   : > { %3660 = vmatprep.subr.bf16.mxu0 %v5085_v12  ;;  %v5143_v12 = vld [vmem:[%s7079_s10 + $0x1b0] ss:$8 sps:$4 sm:$0xff]  }
 0x1aa   : > { %1967 = vmatpush1.bf16.msra.mxu1 %v5053_v34  ;;  %v5130_v34 = vld [vmem:[%s7079_s10 + $0x94] ss:$8 sps:$4 sm:$0xff]  }
 0x1ab   : > { %1968 = vmatprep.subr.bf16.mxu1 %v5058_v46 }
 0x1ac   : > { %3661 = vmatpush1.bf16.msra.mxu0 %v5083_v32  ;;  %v5145_v32 = vld [vmem:[%s7079_s10 + $0x1b4] ss:$8 sps:$4 sm:$0xff]  }
 0x1ad   : > { %1954 = vmatmul.mubr.bf16.gmra.mrb[12].mxu1 %v5984_v30  ;;  %v5067_v30 = vld [vmem:[%s7073_s4 + $0x354] ss:$8 sps:$4 sm:$0xff]   ;;  %3662 = vmatprep.subr.bf16.mxu0 %v5091_v15  ;;  %v5149_v15 = vld [vmem:[%s7079_s10 + $0x1c0] ss:$8 sps:$4 sm:$0xff]  }
 0x1ae   : > { %1969 = vmatpush1.bf16.msra.mxu1 %v5056_v57  ;;  %1996 = vmatprep.mubr.bf16.mxu1 %v5312_v2  ;;  %v5128_v57 = vld [vmem:[%s7079_s10 + $0x90] ss:$8 sps:$4 sm:$0xff]  }
 0x1af   : > { %1970 = vmatprep.subr.bf16.mxu1 %v5061_v37 }
 0x1b0   : > { %3663 = vmatpush1.bf16.msra.mxu0 %v5089_v5  ;;  %v5151_v5 = vld [vmem:[%s7079_s10 + $0x1c4] ss:$8 sps:$4 sm:$0xff]  }
 0x1b1   : > { %3664 = vmatprep.subr.bf16.mxu0 %v5097_v58 }
 0x1b2   : > { %1971 = vmatpush1.bf16.msra.mxu1 %v5059_v24 }
 0x1b3   : > { %1972 = vmatprep.subr.bf16.mxu1 %v5064_v4  ;;  %v5134_v4 = vld [vmem:[%s7079_s10 + $0xa0] ss:$8 sps:$4 sm:$0xff]  }
 0x1b4   : > { %3665 = vmatpush1.bf16.msra.mxu0 %v5095_v55  ;;  %v5152_v55 = vld [vmem:[%s7079_s10 + $0xd0] ss:$8 sps:$4 sm:$0xff]  }
 0x1b6   : > { %1973 = vmatpush1.bf16.msra.mxu1 %v5062_v56  ;;  %v5136_v56 = vld [vmem:[%s7079_s10 + $0xa4] ss:$8 sps:$4 sm:$0xff]  }
 0x1b7   : > { %1974 = vmatprep.subr.bf16.mxu1 %v5067_v30  ;;  %v5137_v30 = vld [vmem:[%s7079_s10 + $0x1a0] ss:$8 sps:$4 sm:$0xff]  }
 0x1ba   : > { %1975 = vmatpush1.bf16.msra.mxu1 %v5065_v45 }
 0x1bb   : > { %1976 = vmatprep.subr.bf16.mxu1 %v5070_v31  ;;  %v5139_v31 = vld [vmem:[%s7079_s10 + $0x1a4] ss:$8 sps:$4 sm:$0xff]  }
 0x1be   : > { %1977 = vmatpush1.bf16.msra.mxu1 %v5068_v21  ;;  %v5142_v21 = vld [vmem:[%s7079_s10 + $0xb4] ss:$8 sps:$4 sm:$0xff]  }
 0x1bf   : > { %1978 = vmatprep.subr.bf16.mxu1 %v5073_v25  ;;  %v5140_v25 = vld [vmem:[%s7079_s10 + $0xb0] ss:$8 sps:$4 sm:$0xff]  }
 0x1c2   : > { %1979 = vmatpush1.bf16.msra.mxu1 %v5071_v53  ;;  %v5148_v53 = vld [vmem:[%s7079_s10 + $0xc4] ss:$8 sps:$4 sm:$0xff]  }
 0x1c3   : > { %3605 = vmatprep.subr.bf16.mxu1 %v5076_v38  ;;  %v5146_v38 = vld [vmem:[%s7079_s10 + $0xc0] ss:$8 sps:$4 sm:$0xff]  }
 0x1c5   : > { %1997 = vmatmul.mubr.bf16.vlgmr.msra.gmra.mrb[8].mxu1 %v5993_v63  ;;  %v5103_v63 = vld [vmem:[%s7079_s10 + $0x144] ss:$8 sps:$4 sm:$0xff]  }
 0x1c6   : > { %2006 = vmatprep.mubr.bf16.mxu1 %v5312_v2  ;;  %3606 = vmatpush1.bf16.msra.mxu1 %v5074_v52  ;;  %v5154_v52 = vld [vmem:[%s7079_s10 + $0xd4] ss:$8 sps:$4 sm:$0xff]  }
 0x1c7   : > { %3607 = vmatprep.subr.bf16.mxu1 %v5082_v35  ;;  %3666 = vmatprep.subr.bf16.mxu0 %v5103_v63  ;;  %v5157_v35 = vld [vmem:[%s7079_s10 + $0x1d4] ss:$8 sps:$4 sm:$0xff]   ;;  %v5163_v63 = vld [vmem:[%s7079_s10 + $0x1e4] ss:$8 sps:$4 sm:$0xff]  }
 0x1c8   : > { %3667 = vmatpush1.bf16.msra.mxu0 %v5101_v22 }
 0x1c9   : > { %3668 = vmatprep.subr.bf16.mxu0 %v5109_v47 }
 0x1ca   : > { %3608 = vmatpush1.bf16.msra.mxu1 %v5080_v10  ;;  %v5155_v10 = vld [vmem:[%s7079_s10 + $0x1d0] ss:$8 sps:$4 sm:$0xff]  }
 0x1cb   : > { %3609 = vmatprep.subr.bf16.mxu1 %v5088_v41  ;;  %v5160_v41 = vld [vmem:[%s7079_s10 + $0xe4] ss:$8 sps:$4 sm:$0xff]  }
 0x1cc   : > { %3669 = vmatpush1.bf16.msra.mxu0 %v5107_v13  ;;  %v5158_v13 = vld [vmem:[%s7079_s10 + $0xe0] ss:$8 sps:$4 sm:$0xff]  }
 0x1cd   : > { %2007 = vmatmul.mubr.bf16.gmra.mrb[12].mxu1 %v5996_v0  ;;  %3670 = vmatprep.subr.bf16.mxu0 %v5115_v23  ;;  %v5121_v0 = vld [vmem:[%s7079_s10 + $0x174] ss:$8 sps:$4 sm:$0xff]  }
 0x1ce   : > { %3610 = vmatpush1.bf16.msra.mxu1 %v5086_v1 }
 0x1cf   : > { %3611 = vmatprep.subr.bf16.mxu1 %v5094_v6 }
 0x1d0   : > { %3671 = vmatpush1.bf16.msra.mxu0 %v5113_v61  ;;  %v5169_v61 = vld [vmem:[%s7079_s10 + $0x1f4] ss:$8 sps:$4 sm:$0xff]  }
 0x1d1   : > { %3672 = vmatprep.subr.bf16.mxu0 %v5121_v0  ;;  %v5164_v0 = vld [vmem:[%s7079_s10 + $0xf0] ss:$8 sps:$4 sm:$0xff]  }
 0x1d2   : > { %3612 = vmatpush1.bf16.msra.mxu1 %v5092_v48  ;;  %v5161_v48 = vld [vmem:[%s7079_s10 + $0x1e0] ss:$8 sps:$4 sm:$0xff]  }
 0x1d3   : > { %3613 = vmatprep.subr.bf16.mxu1 %v5100_v60  ;;  %v5166_v60 = vld [vmem:[%s7079_s10 + $0xf4] ss:$8 sps:$4 sm:$0xff]  }
 0x1d4   : > { %3673 = vmatpush1.bf16.msra.mxu0 %v5119_v44  ;;  %v6664_v44 = vld [vmem:[%s7079_s10 + $0x304] ss:$8 sps:$4 sm:$0xff]  }
 0x1d5   : > { %3674 = vmatprep.subr.bf16.mxu0 %v5127_v14 }
 0x1d6   : > { %3614 = vmatpush1.bf16.msra.mxu1 %v5098_v7  ;;  %v6553_v27 = vpop.permute.xlu0 %4074 }
 0x1d7   : > { %3615 = vmatprep.subr.bf16.mxu1 %v5106_v51  ;;  %v5167_v51 = vld [vmem:[%s7079_s10 + $0x1f0] ss:$8 sps:$4 sm:$0xff]  }
 0x1d8   : > { %3675 = vmatpush1.bf16.msra.mxu0 %v5125_v26 }
 0x1d9   : > { %3676 = vmatprep.subr.bf16.mxu0 %v5133_v28 }
 0x1da   : > { %3616 = vmatpush1.bf16.msra.mxu1 %v5104_v16  ;;  %v5172_v16 = vld [vmem:[%s7079_s10 + $0x204] ss:$8 sps:$4 sm:$0xff]  }
 0x1db   : > { %3617 = vmatprep.subr.bf16.mxu1 %v5112_v3  ;;  %v4077_v33 = vpop.permute.xlu1 %4076 }
 0x1dc   : > { %v4090_v17 = vsel %vm4053_vm12, %v6553_v27, %v4077_v33  ;;  %v6576_v46 = vpop.permute.xlu0 %4078  ;;  %3677 = vmatpush1.bf16.msra.mxu0 %v5131_v54 }
 0x1dd   : > { %4115 = vst [vmem:[%s6052_s24 + $0x28] sm:$0xff] %v4090_v17  ;;  %3678 = vmatprep.subr.bf16.mxu0 %v5139_v31 }
 0x1de   : > { %3618 = vmatpush1.bf16.msra.mxu1 %v5110_v29 }
 0x1df   : > { %3619 = vmatprep.subr.bf16.mxu1 %v5118_v19 }
 0x1e0   : > { %3679 = vmatpush1.bf16.msra.mxu0 %v5137_v30 }
 0x1e1   : > { %3680 = vmatprep.subr.bf16.mxu0 %v5145_v32 }
 0x1e2   : > { %3620 = vmatpush1.bf16.msra.mxu1 %v5116_v43 }
 0x1e3   : > { %3621 = vmatprep.subr.bf16.mxu1 %v5124_v36  ;;  %v4081_v42 = vpop.permute.xlu1 %4080 }
 0x1e4   : > { %v4091_v50 = vsel %vm4053_vm12, %v6576_v46, %v4081_v42  ;;  %v6584_v37 = vpop.permute.xlu0 %4082  ;;  %3681 = vmatpush1.bf16.msra.mxu0 %v5143_v12 }
 0x1e5   : > { %4121 = vst [vmem:[%s6052_s24 + $0x58] sm:$0xff] %v4091_v50  ;;  %3682 = vmatprep.subr.bf16.mxu0 %v5151_v5 }
 0x1e6   : > { %3622 = vmatpush1.bf16.msra.mxu1 %v5122_v40 }
 0x1e7   : > { %3623 = vmatprep.subr.bf16.mxu1 %v5130_v34  ;;  %v4085_v24 = vpop.permute.xlu1 %4084 }
 0x1e8   : > { %v4092_v45 = vsel %vm4053_vm12, %v6584_v37, %v4085_v24  ;;  %3683 = vmatpush1.bf16.msra.mxu0 %v5149_v15 }
 0x1e9   : > { %4127 = vst [vmem:[%s6052_s24 + $0x88] sm:$0xff] %v4092_v45  ;;  %3684 = vmatprep.subr.bf16.mxu0 %v5157_v35 }
 0x1ea   : > { %3624 = vmatpush1.bf16.msra.mxu1 %v5128_v57 }
 0x1eb   : > { %3625 = vmatprep.subr.bf16.mxu1 %v5136_v56 }
 0x1ec   : > { %3685 = vmatpush1.bf16.msra.mxu0 %v5155_v10 }
 0x1ed   : > { %3686 = vmatprep.subr.bf16.mxu0 %v5163_v63 }
 0x1ee   : > { %3626 = vmatpush1.bf16.msra.mxu1 %v5134_v4 }
 0x1ef   : > { %3627 = vmatprep.subr.bf16.mxu1 %v5142_v21 }
 0x1f0   : > { %3687 = vmatpush1.bf16.msra.mxu0 %v5161_v48 }
 0x1f1   : > { %3688 = vmatprep.subr.bf16.mxu0 %v5169_v61 }
 0x1f2   : > { %3628 = vmatpush1.bf16.msra.mxu1 %v5140_v25 }
 0x1f3   : > { %3629 = vmatprep.subr.bf16.mxu1 %v5148_v53 }
 0x1f4   : > { %3689 = vmatpush1.bf16.msra.mxu0 %v5167_v51 }
 0x1f5   : > { %3711 = vmatprep.subr.bf16.mxu0 %v5172_v16 }
 0x1f6   : > { %3630 = vmatpush1.bf16.msra.mxu1 %v5146_v38 }
 0x1f7   : > { %3631 = vmatprep.subr.bf16.mxu1 %v5154_v52 }
 0x1fa   : > { %v4568_v58 = vpop.f32.mrb[16].mxu0  ;;  %3632 = vmatpush1.bf16.msra.mxu1 %v5152_v55 }
 0x1fb   : > { %v4569_v22 = vpop.f32.mrb[17].mxu0  ;;  %3633 = vmatprep.subr.bf16.mxu1 %v5160_v41 }
 0x1fc   : > { %v4570_v47 = vadd.f32 %v4569_v22, %v4568_v58  ;;  %v4571_v1 = vpop.f32.mrb[18].mxu0 }
 0x1fd   : > { %v4572_v6 = vpop.f32.mrb[19].mxu0 }
 0x1fe   : > { %v4573_v23 = vadd.f32 %v4572_v6, %v4571_v1  ;;  %3634 = vmatpush1.bf16.msra.mxu1 %v5158_v13  ;;  %v4435_v13 = vld [vmem:[%s7078_s9] ss:$0 sm:$0xff] }
 0x1ff   : > { %3635 = vmatprep.subr.bf16.mxu1 %v5166_v60 }
 0x202   : > { %v4574_v7 = vpop.f32.mrb[20].mxu0  ;;  %3636 = vmatpush1.bf16.msra.mxu1 %v5164_v0 }
 0x203   : > { %v4575_v14 = vpop.f32.mrb[21].mxu0  ;;  %4666 = vmatprep.subr.bf16.mxu1 %v6664_v44 }
 0x204   : > { %v4576_v3 = vadd.f32 %v4575_v14, %v4574_v7  ;;  %v4577_v26 = vpop.f32.mrb[22].mxu0 }
 0x205   : > { %v4578_v29 = vpop.f32.mrb[23].mxu0 }
 0x206   : > { %v4579_v19 = vadd.f32 %v4578_v29, %v4577_v26 }
 0x21a   : > { %v4596_v33 = vpop.f32.mrb[24].mxu0 }
 0x21b   : > { %v4597_v17 = vpop.f32.mrb[25].mxu0 }
 0x21c   : > { %v4598_v43 = vadd.f32 %v4597_v17, %v4596_v33  ;;  %v4599_v36 = vpop.f32.mrb[26].mxu0 }
 0x21d   : > { %v4600_v54 = vpop.f32.mrb[27].mxu0 }
 0x21e   : > { %v2698_v40 = vadd.f32 %v4598_v43, %v4570_v47  ;;  %v4601_v28 = vadd.f32 %v4600_v54, %v4599_v36  ;;  %v4434_v47 = vld [vmem:[%s7077_s8] ss:$0 sm:$0xff] }
 0x220   : > { %v2701_v34 = vadd.f32 %v4601_v28, %v4573_v23 }
 0x222   : > { %v4602_v42 = vpop.f32.mrb[28].mxu0 }
 0x223   : > { %v4603_v50 = vpop.f32.mrb[29].mxu0 }
 0x224   : > { %v4604_v57 = vadd.f32 %v4603_v50, %v4602_v42  ;;  %v4605_v24 = vpop.f32.mrb[30].mxu0 }
 0x225   : > { %v4606_v4 = vpop.f32.mrb[31].mxu0 }
 0x226   : > { %v2706_v56 = vadd.f32 %v4604_v57, %v4576_v3  ;;  %v4607_v30 = vadd.f32 %v4606_v4, %v4605_v24 }
 0x228   : > { %v2709_v45 = vadd.f32 %v4607_v30, %v4579_v19 }
 0x23a   : > { %v4624_v31 = vpop.f32.mrb[32].mxu0 }
 0x23b   : > { %v4625_v21 = vpop.f32.mrb[33].mxu0 }
 0x23c   : > { %v4626_v32 = vadd.f32 %v4625_v21, %v4624_v31  ;;  %v4627_v25 = vpop.f32.mrb[34].mxu0 }
 0x23d   : > { %v4628_v12 = vpop.f32.mrb[35].mxu0 }
 0x23e   : > { %v4629_v53 = vadd.f32 %v4628_v12, %v4627_v25  ;;  %v2747_v5 = vadd.f32 %v4626_v32, %v2698_v40 }
 0x240   : > { %v2750_v38 = vadd.f32 %v4629_v53, %v2701_v34 }
 0x242   : > { %v4630_v15 = vpop.f32.mrb[36].mxu0 }
 0x243   : > { %v4631_v52 = vpop.f32.mrb[37].mxu0 }
 0x244   : > { %v4632_v35 = vadd.f32 %v4631_v52, %v4630_v15  ;;  %v4633_v55 = vpop.f32.mrb[38].mxu0 }
 0x245   : > { %v4634_v58 = vpop.f32.mrb[39].mxu0 }
 0x246   : > { %v4635_v10 = vadd.f32 %v4634_v58, %v4633_v55  ;;  %v2755_v41 = vadd.f32 %v4632_v35, %v2706_v56 }
 0x248   : > { %v2758_v22 = vadd.f32 %v4635_v10, %v2709_v45 }
 0x25a   : > { %v4664_v63 = vpop.f32.mrb[40].mxu0 }
 0x25b   : > { %v2804_v1 = vadd.f32 %v4664_v63, %v2755_v41  ;;  %v2795_v6 = vpop.f32.mrb[41].mxu0 }
 0x25c   : > { %v2796_v23 = vadd.f32 %v2795_v6, %v2747_v5  ;;  %v4665_v48 = vpop.f32.mrb[42].mxu0 }
 0x25d   : > { %v2819_v60 = vmul.f32 %v4434_v47, %v2804_v1  ;;  %v2807_v61 = vadd.f32 %v4665_v48, %v2758_v22  ;;  %v2798_v0 = vpop.f32.mrb[43].mxu0 }
 0x25e   : > { %v2817_v7 = vmul.f32 %v4434_v47, %v2796_v23  ;;  %v2799_v51 = vadd.f32 %v2798_v0, %v2750_v38  ;;  %v6704_v0 = vld [vmem:[%s7079_s10 + $0x300] ss:$8 sps:$4 sm:$0xff]  }
 0x25f   : > { %v2830_v14 = vadd.f32 %v4435_v13, %v2819_v60  ;;  %v2820_v16 = vmul.f32 %v4434_v47, %v2807_v61 }
 0x260   : > { %v2828_v3 = vadd.f32 %v4435_v13, %v2817_v7  ;;  %v2818_v26 = vmul.f32 %v4434_v47, %v2799_v51 }
 0x261   : > { %v2831_v29 = vadd.f32 %v4435_v13, %v2820_v16  ;;  %v2834_v33 = vmax.f32 %v2830_v14, 0.0 }
 0x262   : > { %v2829_v19 = vadd.f32 %v4435_v13, %v2818_v26  ;;  %v2832_v43 = vmax.f32 %v2828_v3, 0.0  ;;  %v5170_v3 = vld [vmem:[%s7079_s10 + $0x200] ss:$8 sps:$4 sm:$0xff]  }
 0x263   : > { %v2835_v17 = vmax.f32 %v2831_v29, 0.0 }
 0x264   : > { %v2833_v36 = vmax.f32 %v2829_v19, 0.0 }
 0x265   : > { %v2837_v54 = vpack.c.bf16 %v2835_v17, %v2834_v33 }
 0x266   : > { %v2836_v40 = vpack.c.bf16 %v2833_v36, %v2832_v43  ;;  %v5178_v43 = vld [vmem:[%s7079_s10 + $0x214] ss:$8 sps:$4 sm:$0xff]  }
 0x267   : > { %v2847_v28 = vshrl.u32 %v2837_v54, 16  ;;  %v2850_v34 = vshll.u32 %v2837_v54, 16 }
 0x268   : > { %v2839_v42 = vshrl.u32 %v2836_v40, 16  ;;  %v2842_v50 = vshll.u32 %v2836_v40, 16  ;;  %v6721_v40 = vld [vmem:[%s7079_s10 + $0x314] ss:$8 sps:$4 sm:$0xff]  }
 0x269   : > { %v2849_v57 = vrot.slane %v2847_v28, 6  ;;  %v2852_v24 = vrot.slane %v2850_v34, 7 }
 0x26a   : > { %v2841_v4 = vrot.slane %v2839_v42, 6  ;;  %v2844_v56 = vrot.slane %v2842_v50, 7 }
 0x26b   : > { %v2853_v30 = vor.u32 %v2852_v24, %v2849_v57  ;;  %v6731_v57 = vld [vmem:[%s7079_s10 + $0x310] ss:$8 sps:$4 sm:$0xff]  }
 0x26c   : > { %v2845_v45 = vor.u32 %v2844_v56, %v2841_v4 }
 0x26d   : > { %v6678_v31 = vsel %vm5775_vm2, %v2853_v30, 0 }
 0x26e   : > { %v6681_v21 = vsel %vm1029_vm0, %v2845_v45, %v2853_v30  ;;  %v6685_v32 = vsel %vm5775_vm2, 0, %v2845_v45  ;;  %v6688_v25 = vshll.u32 %v6678_v31, 16  ;;  %v2898_v12 = vshrl.u32 %v6678_v31, 16  ;;  %v5176_v45 = vld [vmem:[%s7079_s10 + $0x210] ss:$8 sps:$4 sm:$0xff]  }
 0x26f   : > { %v2861_v53 = vshrl.u32 %v6685_v32, 16  ;;  %v2863_v5 = vshll.u32 %v6685_v32, 16  ;;  %v2868_v38 = vshll.u32 %v6681_v21, 16  ;;  %v2872_v15 = vshrl.u32 %v6681_v21, 16 }
 0x270   : > { %v2884_v52 = vrot.slane %v6685_v32, 1  ;;  %v2885_v35 = vrot.slane %v6681_v21, 1  ;;  %v2878_v20 = vrot.slane %v6688_v25, 1  ;;  %v2900_v55 = vrot.slane %v2898_v12, 1 }
 0x271   : > { %v2865_v58 = vrot.slane %v2863_v5, 1  ;;  %v2870_v10 = vrot.slane %v2868_v38, 1  ;;  %v2891_v41 = vrot.slane %v2861_v53, 1  ;;  %v2892_v22 = vrot.slane %v2863_v5, 2 }
 0x272   : > { %v2894_v63 = vrot.slane %v2872_v15, 1  ;;  %v2895_v47 = vrot.slane %v2868_v38, 2  ;;  %v2886_v1 = vsel %vm1079_vm4, %v2884_v52, %v2885_v35  ;;  %v2901_v6 = vrot.slane %v6688_v25, 2 }
 0x273   : > { %v2866_v13 = vor.u32 %v2865_v58, %v2861_v53  ;;  %v2893_v23 = vor.u32 %v2892_v22, %v2891_v41  ;;  %v2874_v48 = vor.u32 %v2872_v15, %v2870_v10  ;;  %v2887_v60 = vrot.slane %v6678_v31, 1  ;;  %v5190_v58 = vld [vmem:[%s7079_s10 + $0x234] ss:$8 sps:$4 sm:$0xff]   ;;  %v6787_v41 = vld [vmem:[%s7079_s10 + $0x330] ss:$8 sps:$4 sm:$0xff]  }
 0x274   : > { %v2896_v61 = vor.u32 %v2895_v47, %v2894_v63  ;;  %v2902_v7 = vor.u32 %v2901_v6, %v2900_v55  ;;  %v2913_v51 = vrot.slane %v2861_v53, 2  ;;  %v2914_v14 = vrot.slane %v2863_v5, 3  ;;  %v6741_v53 = vld [vmem:[%s7079_s10 + $0x324] ss:$8 sps:$4 sm:$0xff]   ;;  %v5182_v55 = vld [vmem:[%s7079_s10 + $0x220] ss:$8 sps:$4 sm:$0xff]  }
 0x275   : > { %v2871_v16 = vsel %vm1054_vm3, %v2866_v13, %v2870_v10  ;;  %v2879_v26 = vsel %vm1054_vm3, %v2874_v48, %v2878_v20  ;;  %v2888_v29 = vsel %vm1079_vm4, %v2885_v35, %v2887_v60  ;;  %v2916_v19 = vrot.slane %v2872_v15, 2  ;;  %v6780_v10 = vld [vmem:[%s7079_s10 + $0x334] ss:$8 sps:$4 sm:$0xff]   ;;  %v5188_v22 = vld [vmem:[%s7079_s10 + $0x230] ss:$8 sps:$4 sm:$0xff]  }
 0x276   : > { %3637 = vmatprep.mubr.bf16.mxu1 %v2871_v16  ;;  %v2897_v33 = vsel %vm1087_vm5, %v2893_v23, %v2896_v61  ;;  %v2903_v17 = vsel %vm1087_vm5, %v2896_v61, %v2902_v7  ;;  %v2915_v36 = vor.u32 %v2914_v14, %v2913_v51  ;;  %v2917_v54 = vrot.slane %v2868_v38, 3  ;;  %v6795_v63 = vld [vmem:[%s7079_s10 + $0x344] ss:$8 sps:$4 sm:$0xff]   ;;  %v6806_v47 = vld [vmem:[%s7079_s10 + $0x340] ss:$8 sps:$4 sm:$0xff]  }
 0x277   : > { %3690 = vmatprep.mubr.bf16.mxu0 %v2897_v33  ;;  %3638 = vmatmul.mubr.bf16.vlgmr.msra.gmra.mrb[16].mxu1 %v6685_v32  ;;  %v2927_v28 = vrot.slane %v6681_v21, 3  ;;  %v2929_v34 = vrot.slane %v6678_v31, 3  ;;  %v2906_v42 = vrot.slane %v6685_v32, 2  ;;  %v2907_v50 = vrot.slane %v6681_v21, 2  ;;  %v6815_v6 = vld [vmem:[%s7079_s10 + $0x354] ss:$8 sps:$4 sm:$0xff]  }
 0x278   : > { %3691 = vmatmul.mubr.bf16.vlgmr.msra.gmra.mrb[44].mxu0 %v2886_v1  ;;  %4674 = vmatpush1.bf16.msra.mxu1 %v6704_v0  ;;  %v2918_v24 = vor.u32 %v2917_v54, %v2916_v19  ;;  %v2920_v4 = vrot.slane %v2898_v12, 2  ;;  %v2921_v56 = vrot.slane %v6688_v25, 3  ;;  %v2909_v30 = vrot.slane %v6678_v31, 2  ;;  %v5184_v31 = vld [vmem:[%s7079_s10 + $0x224] ss:$8 sps:$4 sm:$0xff]  }
 0x279   : > { %3712 = vmatpush1.bf16.msra.mxu0 %v5170_v3  ;;  %3647 = vmatprep.mubr.bf16.mxu1 %v2879_v26  ;;  %v6744_v5 = vsel %vm1125_vm8, %v2927_v28, %v2929_v34  ;;  %v6747_v12 = vsel %vm1103_vm7, %v2906_v42, %v2907_v50  ;;  %v2926_v25 = vrot.slane %v6685_v32, 3  ;;  %v6765_v32 = vld [vmem:[%s7079_s10 + $0x320] ss:$8 sps:$4 sm:$0xff]   ;;  %v5202_v13 = vld [vmem:[%s7079_s10 + $0x254] ss:$8 sps:$4 sm:$0xff]   ;;  %v6873_v33 = vsub.s32 1, %v5755_v39 }
 0x27a   : > { %3700 = vmatprep.mubr.bf16.mxu0 %v2903_v17  ;;  %3713 = vmatprep.subr.bf16.mxu0 %v5178_v43  ;;  %v2919_v38 = vsel %vm1111_vm6, %v2915_v36, %v2918_v24  ;;  %v2922_v15 = vor.u32 %v2921_v56, %v2920_v4  ;;  %v6755_v52 = vsel %vm1103_vm7, %v2907_v50, %v2909_v30  ;;  %v5194_v1 = vld [vmem:[%s7079_s10 + $0x240] ss:$8 sps:$4 sm:$0xff]   ;;  %v6824_v23 = vld [vmem:[%s7079_s10 + $0x350] ss:$8 sps:$4 sm:$0xff]   ;;  %v6833_v60 = vld [vmem:[%s7079_s10 + $0x364] ss:$8 sps:$4 sm:$0xff]  }
 0x27b   : > { %4667 = vmatprep.subr.bf16.mxu1 %v6721_v40  ;;  %v6759_v35 = vsel %vm1125_vm8, %v2926_v25, %v2927_v28  ;;  %v5200_v48 = vld [vmem:[%s7079_s10 + $0x250] ss:$8 sps:$4 sm:$0xff]   ;;  %v5208_v61 = vld [vmem:[%s7079_s10 + $0x264] ss:$8 sps:$4 sm:$0xff]   ;;  %v6842_v7 = vld [vmem:[%s7079_s10 + $0x360] ss:$8 sps:$4 sm:$0xff]  }
 0x27c   : > { %4675 = vmatpush1.bf16.msra.mxu1 %v6731_v57  ;;  %v6768_v20 = vsel %vm1111_vm6, %v2918_v24, %v2922_v15  ;;  %v5206_v51 = vld [vmem:[%s7079_s10 + $0x260] ss:$8 sps:$4 sm:$0xff]   ;;  %v6851_v14 = vld [vmem:[%s7079_s10 + $0x374] ss:$8 sps:$4 sm:$0xff]   ;;  %v6860_v3 = vld [vmem:[%s7079_s10 + $0x370] ss:$8 sps:$4 sm:$0xff]  }
 0x27d   : > { %3714 = vmatpush1.bf16.msra.mxu0 %v5176_v45  ;;  %4668 = vmatprep.subr.bf16.mxu1 %v6741_v53  ;;  %v5214_v16 = vld [vmem:[%s7079_s10 + $0x274] ss:$8 sps:$4 sm:$0xff]   ;;  %v5212_v26 = vld [vmem:[%s7079_s10 + $0x270] ss:$8 sps:$4 sm:$0xff]   ;;  %v2017_v19 = vld [vmem:[%s7074_s5] sm:$0x3] }
 0x27e   : > { %3715 = vmatprep.subr.bf16.mxu0 %v5184_v31  ;;  %v2037_v17 = vld [vmem:[%s7075_s6] sm:$0x3]  ;;  %v2022_v36 = vrot.slane %v2017_v19, %v6006_v62  ;;  %v2026_v54 = vrot.slane %v2017_v19, %v6873_v33  ;;  %v5223_v39 = vld [vmem:[%s7079_s10 + $0x294] ss:$8 sps:$4 sm:$0xff]   ;;  %v5221_v4 = vld [vmem:[%s7079_s10 + $0x290] ss:$8 sps:$4 sm:$0xff]  }
 0x27f   : > { %3648 = vmatmul.mubr.bf16.gmra.mrb[20].mxu1 %v6681_v21  ;;  %v5196_v21 = vld [vmem:[%s7079_s10 + $0x244] ss:$8 sps:$4 sm:$0xff]   ;;  %v5218_v43 = vld [vmem:[%s7079_s10 + $0x280] ss:$8 sps:$4 sm:$0xff]   ;;  %v2042_v28 = vrot.slane %v2037_v17, %v6006_v62  ;;  %v2046_v24 = vrot.slane %v2037_v17, %v6873_v33 }
 0x280   : > { %3701 = vmatmul.mubr.bf16.gmra.mrb[48].mxu0 %v2888_v29  ;;  %4676 = vmatpush1.bf16.msra.mxu1 %v6765_v32  ;;  %v5220_v29 = vld [vmem:[%s7079_s10 + $0x284] ss:$8 sps:$4 sm:$0xff]  }
 0x281   : > { %3716 = vmatpush1.bf16.msra.mxu0 %v5182_v55  ;;  %3743 = vmatprep.mubr.bf16.mxu0 %v2919_v38  ;;  %v5226_v45 = vld [vmem:[%s7079_s10 + $0x2a4] ss:$8 sps:$4 sm:$0xff]  }
 0x282   : > { %3717 = vmatprep.subr.bf16.mxu0 %v5190_v58  ;;  %4669 = vmatprep.subr.bf16.mxu1 %v6780_v10  ;;  %v5232_v17 = vld [vmem:[%s7079_s10 + $0x2c4] ss:$8 sps:$4 sm:$0xff]  }
 0x283   : > { %3806 = vmatprep.mubr.bf16.mxu1 %v5312_v2 }
 0x284   : > { %4677 = vmatpush1.bf16.msra.mxu1 %v6787_v41 }
 0x285   : > { %3718 = vmatpush1.bf16.msra.mxu0 %v5188_v22  ;;  %4670 = vmatprep.subr.bf16.mxu1 %v6795_v63  ;;  %v5224_v22 = vld [vmem:[%s7079_s10 + $0x2a0] ss:$8 sps:$4 sm:$0xff]  }
 0x286   : > { %3719 = vmatprep.subr.bf16.mxu0 %v5196_v21  ;;  %v5229_v21 = vld [vmem:[%s7079_s10 + $0x2b4] ss:$8 sps:$4 sm:$0xff]  }
 0x288   : > { %4678 = vmatpush1.bf16.msra.mxu1 %v6806_v47 }
 0x289   : > { %3720 = vmatpush1.bf16.msra.mxu0 %v5194_v1  ;;  %4671 = vmatprep.subr.bf16.mxu1 %v6815_v6 }
 0x28a   : > { %3721 = vmatprep.subr.bf16.mxu0 %v5202_v13 }
 0x28c   : > { %4679 = vmatpush1.bf16.msra.mxu1 %v6824_v23 }
 0x28d   : > { %3722 = vmatpush1.bf16.msra.mxu0 %v5200_v48  ;;  %4672 = vmatprep.subr.bf16.mxu1 %v6833_v60 }
 0x28e   : > { %3723 = vmatprep.subr.bf16.mxu0 %v5208_v61 }
 0x290   : > { %4680 = vmatpush1.bf16.msra.mxu1 %v6842_v7 }
 0x291   : > { %3724 = vmatpush1.bf16.msra.mxu0 %v5206_v51  ;;  %4673 = vmatprep.subr.bf16.mxu1 %v6851_v14 }
 0x292   : > { %3725 = vmatprep.subr.bf16.mxu0 %v5214_v16 }
 0x294   : > { %4681 = vmatpush1.bf16.msra.mxu1 %v6860_v3 }
 0x295   : > { %3726 = vmatpush1.bf16.msra.mxu0 %v5212_v26  ;;  %v5227_v26 = vld [vmem:[%s7079_s10 + $0x2b0] ss:$8 sps:$4 sm:$0xff]  }
 0x296   : > { %3727 = vmatprep.subr.bf16.mxu0 %v5220_v29 }
 0x297   : > { %3807 = vmatmul.mubr.bf16.vlgmr.msra.gmra.mrb[24].mxu1 %v6744_v5 }
 0x298   : > { %v1998_v34 = vpop.f32.mrb[8].mxu1 }
 0x299   : > { %3728 = vmatpush1.bf16.msra.mxu0 %v5218_v43  ;;  %v2029_v42 = vmul.f32 %v2022_v36, %v1998_v34  ;;  %v2000_v50 = vpop.f32.mrb[9].mxu1 }
 0x29a   : > { %v2030_v56 = vmul.f32 %v2026_v54, %v2000_v50  ;;  %3729 = vmatprep.subr.bf16.mxu0 %v5223_v39  ;;  %v2002_v30 = vpop.f32.mrb[10].mxu1 }
 0x29b   : > { %v2049_v5 = vadd.f32 %v2042_v28, %v2029_v42  ;;  %v2031_v25 = vmul.f32 %v2022_v36, %v2002_v30  ;;  %v2004_v31 = vpop.f32.mrb[11].mxu1 }
 0x29c   : > { %v2032_v38 = vmul.f32 %v2026_v54, %v2004_v31  ;;  %v2050_v55 = vadd.f32 %v2046_v24, %v2030_v56 }
 0x29d   : > { %v2057_v15 = vmax.f32 %v2049_v5, 0.0  ;;  %v2051_v58 = vadd.f32 %v2042_v28, %v2031_v25  ;;  %3730 = vmatpush1.bf16.msra.mxu0 %v5221_v4 }
 0x29e   : > { %3731 = vmatprep.subr.bf16.mxu0 %v5226_v45  ;;  %v2052_v13 = vadd.f32 %v2046_v24, %v2032_v38  ;;  %v2058_v61 = vmax.f32 %v2050_v55, 0.0  ;;  %v5230_v45 = vld [vmem:[%s7079_s10 + $0x2c0] ss:$8 sps:$4 sm:$0xff]   ;;  %v5241_v55 = vld [vmem:[%s7079_s10 + $0x2f4] ss:$8 sps:$4 sm:$0xff]  }
 0x29f   : > { %v2059_v1 = vmax.f32 %v2051_v58, 0.0  ;;  %4037 = vrot.lane.b32.xlu0 %v2057_v15, %s5314_s22  ;;  %v4027_v15 = vmax.f32 %v6386_v9, 0.0  ;;  %v4028_v58 = vmax.f32 %v6388_v11, 0.0 }
 0x2a0   : > { %v2008_v48 = vpop.f32.mrb[12].mxu1  ;;  %v2060_v43 = vmax.f32 %v2052_v13, 0.0 }
 0x2a1   : > { %3732 = vmatpush1.bf16.msra.mxu0 %v5224_v22  ;;  %v2033_v51 = vmul.f32 %v2022_v36, %v2008_v48  ;;  %v2010_v16 = vpop.f32.mrb[13].mxu1  ;;  %4041 = vrot.lane.b32.xlu1 %v2059_v1, %s5314_s22  ;;  %v5239_v22 = vld [vmem:[%s7079_s10 + $0x2f0] ss:$8 sps:$4 sm:$0xff]  }
 0x2a2   : > { %v2034_v29 = vmul.f32 %v2026_v54, %v2010_v16  ;;  %3733 = vmatprep.subr.bf16.mxu0 %v5229_v21  ;;  %v2012_v19 = vpop.f32.mrb[14].mxu1 }
 0x2a3   : > { %v2053_v39 = vadd.f32 %v2042_v28, %v2033_v51  ;;  %v2035_v34 = vmul.f32 %v2022_v36, %v2012_v19  ;;  %v2014_v42 = vpop.f32.mrb[15].mxu1  ;;  %4039 = vrot.lane.b32.xlu0 %v2058_v61, %s5314_s22  ;;  %v5235_v36 = vld [vmem:[%s7079_s10 + $0x2d4] ss:$8 sps:$4 sm:$0xff]  }
 0x2a4   : > { %v2054_v50 = vadd.f32 %v2046_v24, %v2034_v29  ;;  %v2036_v4 = vmul.f32 %v2026_v54, %v2014_v42  ;;  %v5233_v54 = vld [vmem:[%s7079_s10 + $0x2d0] ss:$8 sps:$4 sm:$0xff]  }
 0x2a5   : > { %v2061_v56 = vmax.f32 %v2053_v39, 0.0  ;;  %v2055_v30 = vadd.f32 %v2042_v28, %v2035_v34  ;;  %3734 = vmatpush1.bf16.msra.mxu0 %v5227_v26  ;;  %4043 = vrot.lane.b32.xlu1 %v2060_v43, %s5314_s22  ;;  %v5238_v28 = vld [vmem:[%s7079_s10 + $0x2e4] ss:$8 sps:$4 sm:$0xff]  }
 0x2a6   : > { %v2062_v5 = vmax.f32 %v2054_v50, 0.0  ;;  %3735 = vmatprep.subr.bf16.mxu0 %v5232_v17  ;;  %v2056_v25 = vadd.f32 %v2046_v24, %v2036_v4  ;;  %v5236_v24 = vld [vmem:[%s7079_s10 + $0x2e0] ss:$8 sps:$4 sm:$0xff]  }
 0x2a7   : > { %4045 = vrot.lane.b32.xlu0 %v2061_v56, %s5314_s22  ;;  %v2063_v31 = vmax.f32 %v2055_v30, 0.0 }
 0x2a8   : > { %v2064_v38 = vmax.f32 %v2056_v25, 0.0  ;;  %v3837_v25 = vld [vmem:[%s7081_s12] sm:$0x3] }
 0x2a9   : > { %3736 = vmatpush1.bf16.msra.mxu0 %v5230_v45  ;;  %4047 = vrot.lane.b32.xlu1 %v2062_v5, %s5314_s22  ;;  %v3817_v5 = vld [vmem:[%s7080_s11] sm:$0x3] }
 0x2aa   : > { %3737 = vmatprep.subr.bf16.mxu0 %v5235_v36 }
 0x2ab   : > { %4049 = vrot.lane.b32.xlu0 %v2063_v31, %s5314_s22 }
 0x2ad   : > { %3738 = vmatpush1.bf16.msra.mxu0 %v5233_v54  ;;  %4051 = vrot.lane.b32.xlu1 %v2064_v38, %s5314_s22  ;;  %v3822_v54 = vrot.slane %v3817_v5, %v6006_v62 }
 0x2ae   : > { %3739 = vmatprep.subr.bf16.mxu0 %v5238_v28 }
 0x2af   : > { %4086 = vrot.lane.b32.xlu0 %v4027_v15, %s5314_s22 }
 0x2b1   : > { %3740 = vmatpush1.bf16.msra.mxu0 %v5236_v24  ;;  %4088 = vrot.lane.b32.xlu1 %v4028_v58, %s5314_s22  ;;  %v3826_v24 = vrot.slane %v3817_v5, %v6873_v33  ;;  %v3842_v58 = vrot.slane %v3837_v25, %v6006_v62 }
 0x2b2   : > { %3741 = vmatprep.subr.bf16.mxu0 %v5241_v55 }
 0x2b5   : > { %3742 = vmatpush1.bf16.msra.mxu0 %v5239_v22 }
 0x2b6   : > { %3764 = vmatprep.subr.bf16.mxu0 %v6664_v44  ;;  %v5247_v44 = vld [vmem:[%s7072_s3] sm:$0x3f] }
 0x2b8   : > { %3744 = vmatmul.mubr.bf16.vlgmr.msra.gmra.mrb[44].mxu0 %v6747_v12 }
 0x2b9   : > { %3753 = vmatprep.mubr.bf16.mxu0 %v6768_v20  ;;  %3765 = vmatpush1.bf16.msra.mxu0 %v6704_v0  ;;  %v968_v0 = vrot.slane %v5247_v44, %v6873_v33 }
 0x2ba   : > { %3766 = vmatprep.subr.bf16.mxu0 %v6721_v40 }
 0x2bd   : > { %3767 = vmatpush1.bf16.msra.mxu0 %v6731_v57 }
 0x2be   : > { %3768 = vmatprep.subr.bf16.mxu0 %v6741_v53 }
 0x2c0   : > { %3754 = vmatmul.mubr.bf16.gmra.mrb[48].mxu0 %v6755_v52 }
 0x2c1   : > { %3769 = vmatpush1.bf16.msra.mxu0 %v6765_v32  ;;  %3796 = vmatprep.mubr.bf16.mxu0 %v5312_v2  ;;  %v5246_v2 = vld [vmem:[%s7071_s2] sm:$0x3f] }
 0x2c2   : > { %3770 = vmatprep.subr.bf16.mxu0 %v6780_v10  ;;  %v912_v9 = vrot.slane %v5246_v2, %v6873_v33 }
 0x2c4   : > { %v936_v11 = vmul.f32 %v912_v9, %v6011_v8  ;;  %v942_v40 = vmul.f32 %v912_v9, %v6027_v18  ;;  %v948_v52 = vmul.f32 %v912_v9, %v6075_v49 }
 0x2c5   : > { %3771 = vmatpush1.bf16.msra.mxu0 %v6787_v41  ;;  %v954_v41 = vmul.f32 %v912_v9, %v6093_v59 }
 0x2c6   : > { %3772 = vmatprep.subr.bf16.mxu0 %v6795_v63  ;;  %v992_v57 = vadd.f32 %v968_v0, %v936_v11  ;;  %v998_v53 = vadd.f32 %v968_v0, %v942_v40  ;;  %v1004_v10 = vadd.f32 %v968_v0, %v948_v52  ;;  %v3846_v11 = vrot.slane %v3837_v25, %v6873_v33 }
 0x2c8   : > { %v1016_v12 = vmax.f32 %v992_v57, 0.0  ;;  %v1018_v32 = vmax.f32 %v998_v53, 0.0 }
 0x2c9   : > { %3773 = vmatpush1.bf16.msra.mxu0 %v6806_v47 }
 0x2ca   : > { %3774 = vmatprep.subr.bf16.mxu0 %v6815_v6  ;;  %v1020_v6 = vmax.f32 %v1004_v10, 0.0 }
 0x2cd   : > { %3775 = vmatpush1.bf16.msra.mxu0 %v6824_v23  ;;  %v1010_v23 = vadd.f32 %v968_v0, %v954_v41 }
 0x2ce   : > { %3776 = vmatprep.subr.bf16.mxu0 %v6833_v60 }
 0x2d1   : > { %3777 = vmatpush1.bf16.msra.mxu0 %v6842_v7 }
 0x2d2   : > { %3778 = vmatprep.subr.bf16.mxu0 %v6851_v14 }
 0x2d5   : > { %3779 = vmatpush1.bf16.msra.mxu0 %v6860_v3  ;;  %v1022_v3 = vmax.f32 %v1010_v23, 0.0 }
 0x2d8   : > { %3797 = vmatmul.mubr.bf16.vlgmr.msra.gmra.mrb[44].mxu0 %v6759_v35 }
 0x311   : > { %v4038_v35 = vpop.permute.xlu0 %4037 }
 0x312   : > { %v4102_v8 = vsel %vm4053_vm12, %v1016_v12, %v4038_v35 }
 0x313   : > { %4111 = vst [vmem:[%s6052_s24 + $0x8] sm:$0xff] %v4102_v8  ;;  %v4042_v20 = vpop.permute.xlu1 %4041 }
 0x314   : > { %v4103_v63 = vsel %vm4053_vm12, %v1018_v32, %v4042_v20 }
 0x315   : > { %4117 = vst [vmem:[%s6052_s24 + $0x38] sm:$0xff] %v4103_v63  ;;  %v4040_v18 = vpop.permute.xlu0 %4039 }
 0x316   : > { %v4054_v47 = vsel %vm4053_vm12, %v4038_v35, %v4040_v18 }
 0x317   : > { %4112 = vst [vmem:[%s6052_s24 + $0x10] sm:$0xff] %v4054_v47  ;;  %v4044_v49 = vpop.permute.xlu1 %4043 }
 0x318   : > { %v4055_v60 = vsel %vm4053_vm12, %v4042_v20, %v4044_v49 }
 0x319   : > { %4118 = vst [vmem:[%s6052_s24 + $0x40] sm:$0xff] %v4055_v60  ;;  %v4046_v7 = vpop.permute.xlu0 %4045 }
 0x31a   : > { %v4104_v59 = vsel %vm4053_vm12, %v1020_v6, %v4046_v7 }
 0x31b   : > { %4123 = vst [vmem:[%s6052_s24 + $0x68] sm:$0xff] %v4104_v59  ;;  %v4048_v14 = vpop.permute.xlu1 %4047 }
 0x31c   : > { %v4056_v21 = vsel %vm4053_vm12, %v4046_v7, %v4048_v14 }
 0x31d   : > { %4124 = vst [vmem:[%s6052_s24 + $0x70] sm:$0xff] %v4056_v21  ;;  %v4050_v1 = vpop.permute.xlu0 %4049 }
 0x31e   : > { %v4105_v13 = vsel %vm4053_vm12, %v1022_v3, %v4050_v1 }
 0x31f   : > { %4129 = vst [vmem:[%s6052_s24 + $0x98] sm:$0xff] %v4105_v13  ;;  %v4052_v48 = vpop.permute.xlu1 %4051 }
 0x320   : > { %v4057_v61 = vsel %vm4053_vm12, %v4050_v1, %v4052_v48 }
 0x321   : > { %4130 = vst [vmem:[%s6052_s24 + $0xa0] sm:$0xff] %v4057_v61  ;;  %v4087_v51 = vpop.permute.xlu0 %4086 }
 0x323   : > { %v4089_v16 = vpop.permute.xlu1 %4088 }
 0x324   : > { %v4093_v26 = vsel %vm4053_vm12, %v4087_v51, %v4089_v16 }
 0x325   : > { %4133 = vst [vmem:[%s6052_s24 + $0xb8] sm:$0xff] %v4093_v26 }
 0x34a   : > { %v3639_v29 = vpop.f32.mrb[16].mxu1 }
 0x34b   : > { %v3641_v19 = vpop.f32.mrb[17].mxu1 }
 0x34c   : > { %v3643_v17 = vpop.f32.mrb[18].mxu1 }
 0x34d   : > { %v3645_v43 = vpop.f32.mrb[19].mxu1 }
 0x352   : > { %v3649_v39 = vpop.f32.mrb[20].mxu1 }
 0x353   : > { %v3651_v34 = vpop.f32.mrb[21].mxu1 }
 0x354   : > { %v3653_v42 = vpop.f32.mrb[22].mxu1 }
 0x355   : > { %v3655_v50 = vpop.f32.mrb[23].mxu1 }
 0x36a   : > { %v3808_v4 = vpop.f32.mrb[24].mxu1 }
 0x36b   : > { %v3810_v56 = vpop.f32.mrb[25].mxu1 }
 0x36c   : > { %v3812_v30 = vpop.f32.mrb[26].mxu1 }
 0x36d   : > { %v3814_v45 = vpop.f32.mrb[27].mxu1 }
 0x393   : > { %v3755_v36 = vpop.f32.mrb[48].mxu0 }
 0x394   : > { %v4686_v31 = vadd.f32 %v3755_v36, %v3649_v39  ;;  %v3757_v28 = vpop.f32.mrb[49].mxu0 }
 0x395   : > { %v4688_v38 = vadd.f32 %v3757_v28, %v3651_v34  ;;  %v3759_v15 = vpop.f32.mrb[50].mxu0 }
 0x396   : > { %v4687_v55 = vadd.f32 %v4686_v31, %v3808_v4  ;;  %v4690_v22 = vadd.f32 %v3759_v15, %v3653_v42  ;;  %v3761_v2 = vpop.f32.mrb[51].mxu0 }
 0x397   : > { %v4689_v9 = vadd.f32 %v4688_v38, %v3810_v56  ;;  %v4692_v44 = vadd.f32 %v3761_v2, %v3655_v50 }
 0x398   : > { %v3833_v0 = vmul.f32 %v4687_v55, %v3822_v54  ;;  %v4691_v40 = vadd.f32 %v4690_v22, %v3812_v30 }
 0x399   : > { %v3834_v57 = vmul.f32 %v4689_v9, %v3826_v24  ;;  %v4693_v53 = vadd.f32 %v4692_v44, %v3814_v45 }
 0x39a   : > { %v3853_v12 = vadd.f32 %v3842_v58, %v3833_v0  ;;  %v3835_v52 = vmul.f32 %v4691_v40, %v3822_v54 }
 0x39b   : > { %v3854_v35 = vadd.f32 %v3846_v11, %v3834_v57  ;;  %v3836_v32 = vmul.f32 %v4693_v53, %v3826_v24 }
 0x39c   : > { %v3861_v8 = vmax.f32 %v3853_v12, 0.0  ;;  %v3855_v62 = vadd.f32 %v3842_v58, %v3835_v52 }
 0x39d   : > { %v3862_v20 = vmax.f32 %v3854_v35, 0.0  ;;  %v3856_v10 = vadd.f32 %v3846_v11, %v3836_v32 }
 0x39e   : > { %4125 = vst [vmem:[%s6052_s24 + $0x78] sm:$0xff] %v3861_v8  ;;  %v3863_v41 = vmax.f32 %v3855_v62, 0.0 }
 0x39f   : > { %v4108_v33 = vsel %vm4053_vm12, %v3862_v20, %v6584_v37  ;;  %v3864_v63 = vmax.f32 %v3856_v10, 0.0 }
 0x3a0   : > { %4126 = vst [vmem:[%s6052_s24 + $0x80] sm:$0xff] %v4108_v33  ;;  %4131 = vst [vmem:[%s6052_s24 + $0xa8] sm:$0xff] %v3863_v41 }
 0x3a1   : > { %v4109_v18 = vsel %vm4053_vm12, %v3864_v63, %v4087_v51 }
 0x3a2   : > { %4132 = vst [vmem:[%s6052_s24 + $0xb0] sm:$0xff] %v4109_v18 }
 0x3ab   : > { %v3798_v47 = vpop.f32.mrb[44].mxu0 }
 0x3ac   : > { %v4682_v49 = vadd.f32 %v3798_v47, %v3639_v29  ;;  %v3800_v6 = vpop.f32.mrb[45].mxu0 }
 0x3ad   : > { %v4683_v23 = vadd.f32 %v3800_v6, %v3641_v19  ;;  %v3802_v60 = vpop.f32.mrb[46].mxu0 }
 0x3ae   : > { %v3829_v7 = vmul.f32 %v4682_v49, %v3822_v54  ;;  %v4684_v59 = vadd.f32 %v3802_v60, %v3643_v17  ;;  %v3804_v14 = vpop.f32.mrb[47].mxu0 }
 0x3af   : > { %v3830_v3 = vmul.f32 %v4683_v23, %v3826_v24  ;;  %v4685_v21 = vadd.f32 %v3804_v14, %v3645_v43 }
 0x3b0   : > { %v3849_v37 = vadd.f32 %v3842_v58, %v3829_v7  ;;  %v3831_v1 = vmul.f32 %v4684_v59, %v3822_v54 }
 0x3b1   : > { %v3850_v13 = vadd.f32 %v3846_v11, %v3830_v3  ;;  %v3832_v48 = vmul.f32 %v4685_v21, %v3826_v24 }
 0x3b2   : > { %v3857_v61 = vmax.f32 %v3849_v37, 0.0  ;;  %v3851_v51 = vadd.f32 %v3842_v58, %v3831_v1 }
 0x3b3   : > { %v3858_v16 = vmax.f32 %v3850_v13, 0.0  ;;  %v3852_v26 = vadd.f32 %v3846_v11, %v3832_v48 }
 0x3b4   : > { %4113 = vst [vmem:[%s6052_s24 + $0x18] sm:$0xff] %v3857_v61  ;;  %v3859_v29 = vmax.f32 %v3851_v51, 0.0 }
 0x3b5   : > { %v4106_v19 = vsel %vm4053_vm12, %v3858_v16, %v6553_v27  ;;  %v3860_v17 = vmax.f32 %v3852_v26, 0.0 }
 0x3b6   : > { %4114 = vst [vmem:[%s6052_s24 + $0x20] sm:$0xff] %v4106_v19  ;;  %4119 = vst [vmem:[%s6052_s24 + $0x48] sm:$0xff] %v3859_v29 }
 0x3b7   : > { %v4107_v43 = vsel %vm4053_vm12, %v3860_v17, %v6576_v46 }
 0x3b8   : > { %4120 = vst [vmem:[%s6052_s24 + $0x50] sm:$0xff] %v4107_v43 }
 0x3b9   : > { %5261 = shalt.err (!%p5258_p3)
}
 0x3ba   : > { %s5262_s24 = scalar_lea.hbm %s7021_s29, 3072  ;;  %s5266_s19 = scalar_lea.hbm %s7082_s13, 6144 }
 0x3bb   : > { %p5263_p4 = scmp.ne.s32.totalorder %s7021_s29, %s5262_s24  ;;  %p5267_p9 = scmp.lt.u32.totalorder %s7021_s29, %s7082_s13 }
 0x3bc   : > { %p5268_p10 = scmp.lt.u32.totalorder %s5266_s19, %s5262_s24  ;;  %p5270_p12 = scmp.lt.u32.totalorder %s5262_s24, %s7021_s29 }
 0x3bd   : > { %p5264_p7 = pnand %p5263_p4, %p5426_p5 }
 0x3be   : > { %p5269_p11 = por %p5268_p10, %p5267_p9 }
 0x3bf   : > { %p5265_p8 = pneg %p5264_p7 }
 0x3c0   : > { %p5271_p13 = por %p5270_p12, %p5269_p11 }
 0x3c2   : > { %p5272_p0 = pnand %p5271_p13, %p5265_p8 }
 0x3c4   : > { %5275 = shalt.err (!%p5272_p0)
}
 0x3c5   : > { %s5316_s21 = smov 768   ;;  %s5317_s20 = smov 48  }
 0x3c6   : > { %4732 = dma.vmem_to_hbm [thread:$0]  (%p5426_p5), %s7014_s14, 3072, %s7021_s29, %s7028_s16, %s5316_s21, %s5316_s21, %s5317_s20  }
 0x3c7 PF: > { %p4738_p1 = scmp.ge.s32.totalorder %s5310_s28, 2  ;;  %s4163_s27 = sand.u32 1, %s5298_s25  }
 0x3c8   : > { %s4164_s24 = scalar_lea.sflag [#allocation3], %s4163_s27 }
 0x3c9   : > { %p4735_p2 = pnand %p4738_p1, %p5430_p6 }
 0x3cb   : > { %5293 = dma.done.wait (!%p4735_p2), %s4164_s24, 3072  }
 0x3cc   : > { %5295 = vsyncadd (!%p4735_p2), %s4164_s24, 4294964224  ;;  %s7098_s28 = sld [smem:[#allocation6_spill]]  ;;  %s7099_s17 = sld [smem:[#allocation5_spill]] }
 0x3cd   : > { %s7100_s27 = sld [smem:[#allocation7_spill]]  ;;  %s7101_s25 = smov %s5302_s26 }
 0x3d2   : > { %p23_p3 = scmp.ge.s32.totalorder %s7098_s28, 4   ;;  %s7102_s26 = smov %s7099_s17 }
 0x3d4   :  { %25 = sbr.rel (!%p23_p3) target bundleno = 3 (0x3), region = 107 }
 0x3db   :  { %4169 = vsyncpa [#allocation3], 1 }
 0x3dc   :  { %4171 = vsyncpa [#allocation3 + $0x1], 1 }

</bundles_post_ra>
